<compile_context>
chip_gen: v7x
topology: tpu7x:2x2x1
jax: 0.10.0
libtpu: 0.0.40
codegen_flags: <defaults>
</compile_context>

<pallas_src>
import functools
from typing import Sequence

import jax
import jax.numpy as jnp
from jax.experimental import pallas as pl
from jax.experimental.pallas import tpu as pltpu


_RELU_SLOPE = 0.2
_BN_EPS = 1e-5
_MAX_TILE_M = 512                       # lanes per grid step (512-1024 sweet spot)
_VMEM_LIMIT_BYTES = 32 * 1024 * 1024    # raise scoped VMEM (v5e default is 16 MiB)

_ANY_VMEM = functools.partial(pl.BlockSpec, memory_space=pltpu.MemorySpace.VMEM)


def _round_up(v, m):
    return ((v + m - 1) // m) * m


# -----------------------------------------------------------------------------
# Pallas kernels
# -----------------------------------------------------------------------------
def conv_act_stats_kernel(p_ref, w_ref, b_ref, y_ref, st_ref, *,
                          relu_slope, tile_m, m_valid):
    """One M-tile: y = LeakyReLU(W @ P + b); write pre-BN y (f32) plus the
    per-channel partial (sum, sum-of-squares) for this tile."""
    y = jnp.dot(w_ref[...], p_ref[...], preferred_element_type=jnp.float32)
    y = y + b_ref[...]
    y = jnp.maximum(y, relu_slope * y)          # LeakyReLU (slope < 1): mul+max
    y_ref[...] = y
    if m_valid is not None:                     # mask padded lanes out of stats
        col = (pl.program_id(0) * tile_m
               + jax.lax.broadcasted_iota(jnp.int32, y.shape, 1))
        y = jnp.where(col < m_valid, y, 0.0)
    st_ref[0, :, 0:1] = jnp.sum(y, axis=1, keepdims=True)       # XLU reductions
    st_ref[0, :, 1:2] = jnp.sum(y * y, axis=1, keepdims=True)


def bn_norm_kernel(y_ref, mi_ref, o_ref, *, apply_sigmoid):
    """One M-tile: out = (y - mean) * inv_std  [+ Sigmoid]."""
    out = (y_ref[...] - mi_ref[:, 0:1]) * mi_ref[:, 1:2]
    if apply_sigmoid:
        out = jax.nn.sigmoid(out)
    o_ref[...] = out.astype(o_ref.dtype)


def bottleneck_kernel(x_ref, wml_ref, bml_ref, eps_ref, wout_ref, bout_ref,
                      mulv_ref, h_ref, *, latent):
    """Fused InBottleneck (mu & log_var in one matmul, one lane-dense store) +
    reparameterisation + OutBottleneck Linear.  z stays in VMEM."""
    ml = jnp.dot(x_ref[...], wml_ref[...],
                 preferred_element_type=jnp.float32) + bml_ref[...]
    mulv_ref[...] = ml                                   # (N, 2*latent), one store
    mu = ml[:, :latent]
    sigma = jnp.exp(0.5 * ml[:, latent:])
    z = mu + sigma * eps_ref[...]
    h = jnp.dot(z.astype(wout_ref.dtype), wout_ref[...],
                preferred_element_type=jnp.float32) + bout_ref[...]
    h_ref[...] = h.astype(h_ref.dtype)


# -----------------------------------------------------------------------------
# pallas_call wrappers
# -----------------------------------------------------------------------------
def fused_conv_bn(patches, weight, bias, *, group, out_dtype, apply_sigmoid,
                  tile_m=_MAX_TILE_M):
    """conv-as-matmul + bias + LeakyReLU + BatchNorm (+Sigmoid), M-tiled.

    patches: (K, M) bf16,  weight: (Crows, K) bf16,  bias: (Crows, 1) f32.
    `group` row-groups of Crows//group channels share BatchNorm statistics
    (group = s*s for the merged sub-pixel ConvTranspose, 1 for Conv2d).
    Two pipelined passes over M: (1) matmul+activation+partial stats,
    (2) normalize.  Grid axis is "parallel" (megacore-shardable on v7x).
    """
    crows, k_dim = weight.shape
    m = patches.shape[1]
    tm = min(tile_m, _round_up(m, 128))
    ntiles = -(-m // tm)
    m_pad = ntiles * tm
    if m_pad != m:
        patches = jnp.pad(patches, ((0, 0), (0, m_pad - m)))
    m_valid = m if m_pad != m else None

    cparams = pltpu.CompilerParams(dimension_semantics=("parallel",),
                                   vmem_limit_bytes=_VMEM_LIMIT_BYTES)

    y, stats = pl.pallas_call(
        functools.partial(conv_act_stats_kernel, relu_slope=_RELU_SLOPE,
                          tile_m=tm, m_valid=m_valid),
        grid=(ntiles,),
        out_shape=(jax.ShapeDtypeStruct((crows, m_pad), jnp.float32),
                   jax.ShapeDtypeStruct((ntiles, crows, 2), jnp.float32)),
        in_specs=[pl.BlockSpec((k_dim, tm), lambda i: (0, i)),
                  pl.BlockSpec((crows, k_dim), lambda i: (0, 0)),
                  pl.BlockSpec((crows, 1), lambda i: (0, 0))],
        out_specs=(pl.BlockSpec((crows, tm), lambda i: (0, i)),
                   pl.BlockSpec((1, crows, 2), lambda i: (i, 0, 0))),
        compiler_params=cparams,
    )(patches, weight, bias)

    # Tiny XLA reduction of the partials: over tiles, then over the `group`
    # row-groups that share one BatchNorm channel.
    cout = crows // group
    st = jnp.sum(stats, axis=0).reshape(group, cout, 2).sum(axis=0)
    count = float(group * m)
    mean = st[:, 0] / count
    var = jnp.maximum(st[:, 1] / count - mean * mean, 0.0)      # clamp >= 0
    inv_std = jax.lax.rsqrt(var + _BN_EPS)
    mi = jnp.tile(jnp.stack([mean, inv_std], axis=-1), (group, 1))  # (Crows, 2)

    out = pl.pallas_call(
        functools.partial(bn_norm_kernel, apply_sigmoid=apply_sigmoid),
        grid=(ntiles,),
        out_shape=jax.ShapeDtypeStruct((crows, m_pad), out_dtype),
        in_specs=[pl.BlockSpec((crows, tm), lambda i: (0, i)),
                  pl.BlockSpec((crows, 2), lambda i: (0, 0))],
        out_specs=pl.BlockSpec((crows, tm), lambda i: (0, i)),
        compiler_params=cparams,
    )(y, mi)
    return out[:, :m] if m_pad != m else out


def bottleneck_call(flat, w_ml, b_ml, eps, w_out, b_out, *, latent):
    n = flat.shape[0]
    f = w_out.shape[1]
    return pl.pallas_call(
        functools.partial(bottleneck_kernel, latent=latent),
        out_shape=(jax.ShapeDtypeStruct((n, 2 * latent), jnp.float32),
                   jax.ShapeDtypeStruct((n, f), jnp.bfloat16)),
        in_specs=[_ANY_VMEM()] * 6,
        out_specs=(_ANY_VMEM(), _ANY_VMEM()),
        compiler_params=pltpu.CompilerParams(
            vmem_limit_bytes=_VMEM_LIMIT_BYTES),
    )(flat, w_ml, b_ml, eps, w_out, b_out)


# -----------------------------------------------------------------------------
# Glue: patch extraction (encoder) and sub-pixel plan (decoder)
# -----------------------------------------------------------------------------
def calculate_conv_output_size(inp, padding, kernel_size, stride):
    return int((inp + 2 * padding - (kernel_size - 1) - 1) / stride + 1)


def extract_patches_cm(x, k, stride):
    """x: (C, N, H, W), padding=1 -> patches (C*k*k, N*OH*OW), OH, OW."""
    # TODO(synk): build these windows inside the kernel from one VMEM copy of
    #             the padded input to avoid the k*k im2col HBM amplification.
    c, n, h, w = x.shape
    xp = jnp.pad(x, ((0, 0), (0, 0), (1, 1), (1, 1)))
    oh = (h + 2 - k) // stride + 1
    ow = (w + 2 - k) // stride + 1
    slabs = []
    for i in range(k):
        for j in range(k):
            slabs.append(xp[:, :,
                            i:i + stride * (oh - 1) + 1:stride,
                            j:j + stride * (ow - 1) + 1:stride])
    col = jnp.stack(slabs, axis=1)                 # (C, k*k, N, OH, OW)
    return col.reshape(c * k * k, n * oh * ow), oh, ow


def _phase_taps(k, s, p):
    """Sub-pixel decomposition of ConvTranspose: for each output phase
    r in [0, s) the direct-conv taps that hit non-inserted input and their
    relative input offsets."""
    lead = k - 1 - p
    plan = []
    for r in range(s):
        taps = [t for t in range(k) if (r + t - lead) % s == 0]
        deltas = [(r + t - lead) // s for t in taps]
        plan.append((taps, deltas))
    return plan


def _phase_sizes(size, k, s, p, op):
    out = (size - 1) * s - 2 * p + k + op
    sizes = [((out - 1 - r) // s + 1) if r < out else 0 for r in range(s)]
    return out, sizes


def convt_block_layer(x, layer, *, apply_sigmoid, out_dtype):
    """ConvTransposeBlock: all s*s sub-pixel phases merged into ONE
    block-diagonal matmul (one kernel pipeline, shared BatchNorm stats),
    recombined with a dense reshape/transpose interleave."""
    cin, n, h, w = x.shape
    k, s = layer["k"], layer["s"]
    tap_plan = layer["tap_plan"]
    cout = layer["cout"]

    oh_full, oh_sizes = _phase_sizes(h, k, s, 1, s - 1)
    ow_full, ow_sizes = _phase_sizes(w, k, s, 1, s - 1)
    n_h, n_w = oh_sizes[0], ow_sizes[0]
    # Merged path needs equal per-phase output sizes (holds for (k-3)%s == 0).
    assert all(v == n_h for v in oh_sizes) and all(v == n_w for v in ow_sizes)

    def pad_amounts(n_out, length):
        lo, hi = 0, 0
        for _, deltas in tap_plan:
            if not deltas:
                continue
            lo = max(lo, -min(deltas))
            hi = max(hi, n_out - 1 + max(deltas) - (length - 1))
        return lo, hi

    lo_h, hi_h = pad_amounts(n_h, h)
    lo_w, hi_w = pad_amounts(n_w, w)
    xp = jnp.pad(x, ((0, 0), (0, 0), (lo_h, hi_h), (lo_w, hi_w)))

    # Concatenate the per-phase patch columns along K (phase order ry*s + rx
    # matches the block-diagonal weight built in build_vae_params).
    cols = []
    for ry in range(s):
        d_h = tap_plan[ry][1]
        for rx in range(s):
            d_w = tap_plan[rx][1]
            slabs = [xp[:, :, lo_h + dy:lo_h + dy + n_h,
                           lo_w + dx:lo_w + dx + n_w]
                     for dy in d_h for dx in d_w]
            cols.append(jnp.stack(slabs, axis=1).reshape(
                cin * len(d_h) * len(d_w), n * n_h * n_w))
    p_cat = jnp.concatenate(cols, axis=0)            # (cin*k*k, n*n_h*n_w)

    out = fused_conv_bn(p_cat, layer["w_bd"], layer["b_bd"], group=s * s,
                        out_dtype=out_dtype, apply_sigmoid=apply_sigmoid)

    # (s*s*cout, M) -> dense sub-pixel interleave (no strided scatter).
    y = out.reshape(s, s, cout, n, n_h, n_w)
    y = jnp.transpose(y, (2, 3, 4, 0, 5, 1))         # (cout, n, n_h, s, n_w, s)
    return y.reshape(cout, n, oh_full, ow_full)


# -----------------------------------------------------------------------------
# Parameter construction (all weight preprocessing hoisted here)
# -----------------------------------------------------------------------------
def build_vae_params(key, input_channels, input_width, input_height,
                     conv_out_channels: Sequence[int],
                     conv_kernels: Sequence[int],
                     conv_strides: Sequence[int],
                     latent_space_dim: int):
    conv_in_channels = [input_channels] + list(conv_out_channels)[:-1]
    conv_shapes = [(conv_in_channels[0], input_width, input_height)]
    for o, k, s in zip(conv_out_channels, conv_kernels, conv_strides):
        ow = calculate_conv_output_size(conv_shapes[-1][1], 1, k, s)
        oh = calculate_conv_output_size(conv_shapes[-1][2], 1, k, s)
        conv_shapes.append((o, ow, oh))
    flat = int(conv_shapes[-1][0] * conv_shapes[-1][1] * conv_shapes[-1][2])

    scale = 0.05
    keys = iter(jax.random.split(key, 64))

    def rnd(shape):
        return scale * jax.random.normal(next(keys), shape, jnp.float32)

    # Encoder: Conv2d weight (Cout, Cin, k, k) -> (Cout, Cin*k*k) bf16.
    enc = []
    for ci, co, k, s in zip(conv_in_channels, conv_out_channels,
                            conv_kernels, conv_strides):
        w = rnd((co, ci, k, k))
        enc.append(dict(w2d=w.reshape(co, ci * k * k).astype(jnp.bfloat16),
                        b=rnd((co,)).reshape(co, 1), k=k, s=s))

    # Bottleneck: mu & log_var fused into one (flat, 2*latent) matrix.
    w_mu, b_mu = rnd((latent_space_dim, flat)), rnd((latent_space_dim,))
    w_lv, b_lv = rnd((latent_space_dim, flat)), rnd((latent_space_dim,))
    bott = dict(
        w_ml=jnp.concatenate([w_mu, w_lv], axis=0).T.astype(jnp.bfloat16),
        b_ml=jnp.concatenate([b_mu, b_lv])[None, :])
    out_bott = dict(w=rnd((flat, latent_space_dim)).T.astype(jnp.bfloat16),
                    b=rnd((flat,))[None, :])

    # Decoder: ConvTranspose2d weight (t_in, t_out, k, k) -> flipped /
    # channel-swapped direct-conv weight, assembled into ONE block-diagonal
    # (s*s*t_out, t_in*k*k) matrix over the s*s sub-pixel phases, bf16.
    dec = []
    for t_in, t_out, k, s in reversed(list(zip(conv_out_channels,
                                               conv_in_channels,
                                               conv_kernels, conv_strides))):
        w_t = rnd((t_in, t_out, k, k))
        w_eq = jnp.transpose(w_t[:, :, ::-1, ::-1], (1, 0, 2, 3))  # (t_out,t_in,k,k)
        tap_plan = _phase_taps(k, s, p=1)
        assert all(len(t) > 0 for t, _ in tap_plan), "kernel_size must be >= stride"
        # TODO(synk): general (k-3)%s != 0 shapes need per-phase column padding
        #             plus row-masked BN statistics in the merged path.
        assert (k - 3) % s == 0, "merged sub-pixel path assumes (k-3)%s == 0"

        blocks = []
        for ry in range(s):
            th = jnp.asarray(tap_plan[ry][0])
            for rx in range(s):
                tw = jnp.asarray(tap_plan[rx][0])
                ws = w_eq[:, :, th, :][:, :, :, tw]       # (t_out,t_in,|th|,|tw|)
                blocks.append(ws.reshape(t_out, -1))
        ktot = sum(b_.shape[1] for b_ in blocks)
        w_bd = jnp.zeros((s * s * t_out, ktot), jnp.float32)
        off = 0
        for p, ws in enumerate(blocks):
            w_bd = w_bd.at[p * t_out:(p + 1) * t_out,
                           off:off + ws.shape[1]].set(ws)
            off += ws.shape[1]
        b_dec = rnd((t_out,)).reshape(t_out, 1)
        dec.append(dict(w_bd=w_bd.astype(jnp.bfloat16),
                        b_bd=jnp.tile(b_dec, (s * s, 1)),
                        cout=t_out, k=k, s=s, tap_plan=tap_plan))

    return dict(enc=enc, bott=bott, out_bott=out_bott, dec=dec,
                conv_shapes=conv_shapes, latent=latent_space_dim)


# -----------------------------------------------------------------------------
# Forward pass
# -----------------------------------------------------------------------------
def vae_forward(params, x, eps_noise):
    """x: (N, C, H, W) float32 (torch NCHW). Returns (mu, log_var, recon)."""
    n = x.shape[0]
    latent = params["latent"]

    # Channel-major activations, bf16 between layers.
    acts = jnp.transpose(x, (1, 0, 2, 3)).astype(jnp.bfloat16)

    for layer in params["enc"]:
        col, oh, ow = extract_patches_cm(acts, layer["k"], layer["s"])
        out = fused_conv_bn(col, layer["w2d"], layer["b"], group=1,
                            out_dtype=jnp.bfloat16, apply_sigmoid=False)
        acts = out.reshape(out.shape[0], n, oh, ow)

    # Flatten in torch NCHW order for the Linear layers.
    flat = jnp.transpose(acts, (1, 0, 2, 3)).reshape(n, -1)
    mulv, h = bottleneck_call(
        flat, params["bott"]["w_ml"], params["bott"]["b_ml"], eps_noise,
        params["out_bott"]["w"], params["out_bott"]["b"], latent=latent)
    mu = mulv[:, :latent]
    log_variance = mulv[:, latent:]

    # Reproduce torch's (C, width, height) unflatten quirk verbatim.
    c_last, w_last, h_last = params["conv_shapes"][-1]
    acts = jnp.transpose(h.reshape(n, c_last, w_last, h_last), (1, 0, 2, 3))

    n_dec = len(params["dec"])
    for li, layer in enumerate(params["dec"]):
        last = li == n_dec - 1
        acts = convt_block_layer(
            acts, layer, apply_sigmoid=last,
            out_dtype=jnp.float32 if last else jnp.bfloat16)

    reconstruction = jnp.transpose(acts, (1, 0, 2, 3))
    return mu, log_variance, reconstruction


# -----------------------------------------------------------------------------
if __name__ == "__main__":
    key = jax.random.PRNGKey(0)
    k_params, k_input, k_noise = jax.random.split(key, 3)

    # 4-channel 16x16 input, two stride-2 conv stages, latent dim 32.
    # batch = 16 keeps every matmul's lane dimension (N*OH*OW) >= 256 and
    # exercises multi-tile (2-step) grids on the largest layers.
    input_channels, H, W = 4, 16, 16
    conv_out_channels = (8, 16)
    conv_kernels = (3, 3)
    conv_strides = (2, 2)
    latent_space_dim = 32
    batch = 16

    params = build_vae_params(k_params, input_channels, W, H,
                              conv_out_channels, conv_kernels, conv_strides,
                              latent_space_dim)

    x = jax.random.normal(k_input, (batch, input_channels, H, W), jnp.float32)
    eps = jax.random.normal(k_noise, (batch, latent_space_dim), jnp.float32)

    fwd = jax.jit(functools.partial(vae_forward, params))
    mu, log_variance, reconstruction = fwd(x, eps)
    jax.block_until_ready((mu, log_variance, reconstruction))

    assert mu.shape == (batch, latent_space_dim)
    assert log_variance.shape == (batch, latent_space_dim)
    assert reconstruction.shape == (batch, input_channels, H, W)
    assert bool(jnp.all(jnp.isfinite(mu)))
    assert bool(jnp.all(jnp.isfinite(log_variance)))
    assert bool(jnp.all(jnp.isfinite(reconstruction)))

    print("KERNEL_OK")
</pallas_src>

<mosaic_0001>
module attributes {stable_mosaic.version = 11 : i64} {
  func.func @conv_act_stats_kernel(%arg0: i32, %arg1: memref<36x512xbf16, #tpu.memory_space<vmem>>, %arg2: memref<8x36xbf16, #tpu.memory_space<vmem>>, %arg3: memref<8x1xf32, #tpu.memory_space<vmem>>, %arg4: memref<8x512xf32, #tpu.memory_space<vmem>>, %arg5: memref<1x8x2xf32, #tpu.memory_space<vmem>>) attributes {dimension_semantics = [#tpu.dimension_semantics<parallel>], iteration_bounds = array<i64: 2>, scalar_prefetch = 0 : i64, scratch_operands = 0 : i64, tpu.core_type = #tpu.core_type<tc>, window_params = [{transform_indices = @transform_0, window_bounds = array<i64: 36, 512>}, {pipeline_mode = #tpu.pipeline_mode<synchronous>, transform_indices = @transform_1, window_bounds = array<i64: 8, 36>}, {pipeline_mode = #tpu.pipeline_mode<synchronous>, transform_indices = @transform_2, window_bounds = array<i64: 8, 1>}, {transform_indices = @transform_3, window_bounds = array<i64: 8, 512>}, {transform_indices = @transform_4, window_bounds = array<i64: 1, 8, 2>}]} {
    %c0 = arith.constant 0 : index
    %c0_0 = arith.constant 0 : index
    %0 = vector.load %arg2[%c0, %c0_0] : memref<8x36xbf16, #tpu.memory_space<vmem>>, vector<8x36xbf16>
    %c0_1 = arith.constant 0 : index
    %c0_2 = arith.constant 0 : index
    %1 = vector.load %arg1[%c0_1, %c0_2] : memref<36x512xbf16, #tpu.memory_space<vmem>>, vector<36x512xbf16>
    %cst = arith.constant dense<0.000000e+00> : vector<8x512xf32>
    %2 = tpu.matmul %0, %1, %cst {dimension_numbers = #tpu.dot_dimension_numbers<[1], [0], [0], [1], [0, 0, 1, 1], [], []>} : vector<8x36xbf16>, vector<36x512xbf16>, vector<8x512xf32> -> vector<8x512xf32>
    %c0_3 = arith.constant 0 : index
    %c0_4 = arith.constant 0 : index
    %3 = vector.load %arg3[%c0_3, %c0_4] : memref<8x1xf32, #tpu.memory_space<vmem>>, vector<8x1xf32>
    %4 = vector.broadcast %3 : vector<8x1xf32> to vector<8x512xf32>
    %5 = arith.addf %2, %4 : vector<8x512xf32>
    %cst_5 = arith.constant 2.000000e-01 : f32
    %6 = vector.broadcast %cst_5 : f32 to vector<8x512xf32>
    %7 = arith.mulf %6, %5 : vector<8x512xf32>
    %8 = arith.maximumf %5, %7 : vector<8x512xf32>
    %c0_6 = arith.constant 0 : index
    %c0_7 = arith.constant 0 : index
    %9 = vector.load %arg4[%c0_6, %c0_7] : memref<8x512xf32, #tpu.memory_space<vmem>>, vector<8x512xf32>
    tpu.vector_store %arg4[%c0_6, %c0_7], %8 {strides = array<i32>} : memref<8x512xf32, #tpu.memory_space<vmem>>, vector<8x512xf32>,
    %cst_8 = arith.constant dense<0.000000e+00> : vector<8xf32>
    %10 = vector.multi_reduction <add>, %8, %cst_8 [1] : vector<8x512xf32> to vector<8xf32>
    %11 = vector.shape_cast %10 : vector<8xf32> to vector<8x1xf32>
    %c0_9 = arith.constant 0 : index
    %c0_10 = arith.constant 0 : index
    %c0_11 = arith.constant 0 : index
    %12 = vector.load %arg5[%c0_9, %c0_10, %c0_11] : memref<1x8x2xf32, #tpu.memory_space<vmem>>, vector<1x8x1xf32>
    %13 = vector.shape_cast %12 : vector<1x8x1xf32> to vector<8x1xf32>
    %14 = vector.shape_cast %11 : vector<8x1xf32> to vector<1x8x1xf32>
    tpu.vector_store %arg5[%c0_9, %c0_10, %c0_11], %14 {strides = array<i32>} : memref<1x8x2xf32, #tpu.memory_space<vmem>>, vector<1x8x1xf32>,
    %15 = arith.mulf %8, %8 : vector<8x512xf32>
    %cst_12 = arith.constant dense<0.000000e+00> : vector<8xf32>
    %16 = vector.multi_reduction <add>, %15, %cst_12 [1] : vector<8x512xf32> to vector<8xf32>
    %17 = vector.shape_cast %16 : vector<8xf32> to vector<8x1xf32>
    %c0_13 = arith.constant 0 : index
    %c0_14 = arith.constant 0 : index
    %c1 = arith.constant 1 : index
    %18 = vector.load %arg5[%c0_13, %c0_14, %c1] : memref<1x8x2xf32, #tpu.memory_space<vmem>>, vector<1x8x1xf32>
    %19 = vector.shape_cast %18 : vector<1x8x1xf32> to vector<8x1xf32>
    %20 = vector.shape_cast %17 : vector<8x1xf32> to vector<1x8x1xf32>
    tpu.vector_store %arg5[%c0_13, %c0_14, %c1], %20 {strides = array<i32>} : memref<1x8x2xf32, #tpu.memory_space<vmem>>, vector<1x8x1xf32>,
    return
  }
  func.func @transform_0(%arg0: i32) -> (i32, i32) {
    %c0_i32 = arith.constant 0 : i32
    %c0_i32_0 = arith.constant 0 : i32
    return %c0_i32, %arg0 : i32, i32
  }
  func.func @transform_1(%arg0: i32) -> (i32, i32) {
    %c0_i32 = arith.constant 0 : i32
    %c0_i32_0 = arith.constant 0 : i32
    %c0_i32_1 = arith.constant 0 : i32
    return %c0_i32, %c0_i32_0 : i32, i32
  }
  func.func @transform_2(%arg0: i32) -> (i32, i32) {
    %c0_i32 = arith.constant 0 : i32
    %c0_i32_0 = arith.constant 0 : i32
    %c0_i32_1 = arith.constant 0 : i32
    return %c0_i32, %c0_i32_0 : i32, i32
  }
  func.func @transform_3(%arg0: i32) -> (i32, i32) {
    %c0_i32 = arith.constant 0 : i32
    %c0_i32_0 = arith.constant 0 : i32
    return %c0_i32, %arg0 : i32, i32
  }
  func.func @transform_4(%arg0: i32) -> (i32, i32, i32) {
    %c0_i32 = arith.constant 0 : i32
    %c0_i32_0 = arith.constant 0 : i32
    %c0_i32_1 = arith.constant 0 : i32
    return %arg0, %c0_i32, %c0_i32_0 : i32, i32, i32
  }
}

module attributes {stable_mosaic.version = 11 : i64} {
  func.func @bn_norm_kernel(%arg0: i32, %arg1: memref<8x512xf32, #tpu.memory_space<vmem>>, %arg2: memref<8x2xf32, #tpu.memory_space<vmem>>, %arg3: memref<8x512xbf16, #tpu.memory_space<vmem>>) attributes {dimension_semantics = [#tpu.dimension_semantics<parallel>], iteration_bounds = array<i64: 2>, scalar_prefetch = 0 : i64, scratch_operands = 0 : i64, tpu.core_type = #tpu.core_type<tc>, window_params = [{transform_indices = @transform_0, window_bounds = array<i64: 8, 512>}, {pipeline_mode = #tpu.pipeline_mode<synchronous>, transform_indices = @transform_1, window_bounds = array<i64: 8, 2>}, {transform_indices = @transform_2, window_bounds = array<i64: 8, 512>}]} {
    %c0 = arith.constant 0 : index
    %c0_0 = arith.constant 0 : index
    %0 = vector.load %arg1[%c0, %c0_0] : memref<8x512xf32, #tpu.memory_space<vmem>>, vector<8x512xf32>
    %c0_1 = arith.constant 0 : index
    %c0_2 = arith.constant 0 : index
    %1 = vector.load %arg2[%c0_1, %c0_2] : memref<8x2xf32, #tpu.memory_space<vmem>>, vector<8x1xf32>
    %2 = vector.broadcast %1 : vector<8x1xf32> to vector<8x512xf32>
    %3 = arith.subf %0, %2 : vector<8x512xf32>
    %c0_3 = arith.constant 0 : index
    %c1 = arith.constant 1 : index
    %4 = vector.load %arg2[%c0_3, %c1] : memref<8x2xf32, #tpu.memory_space<vmem>>, vector<8x1xf32>
    %5 = vector.broadcast %4 : vector<8x1xf32> to vector<8x512xf32>
    %6 = arith.mulf %3, %5 : vector<8x512xf32>
    %7 = arith.truncf %6 : vector<8x512xf32> to vector<8x512xbf16>
    %c0_4 = arith.constant 0 : index
    %c0_5 = arith.constant 0 : index
    %8 = vector.load %arg3[%c0_4, %c0_5] : memref<8x512xbf16, #tpu.memory_space<vmem>>, vector<8x512xbf16>
    tpu.vector_store %arg3[%c0_4, %c0_5], %7 {strides = array<i32>} : memref<8x512xbf16, #tpu.memory_space<vmem>>, vector<8x512xbf16>,
    return
  }
  func.func @transform_0(%arg0: i32) -> (i32, i32) {
    %c0_i32 = arith.constant 0 : i32
    %c0_i32_0 = arith.constant 0 : i32
    return %c0_i32, %arg0 : i32, i32
  }
  func.func @transform_1(%arg0: i32) -> (i32, i32) {
    %c0_i32 = arith.constant 0 : i32
    %c0_i32_0 = arith.constant 0 : i32
    %c0_i32_1 = arith.constant 0 : i32
    return %c0_i32, %c0_i32_0 : i32, i32
  }
  func.func @transform_2(%arg0: i32) -> (i32, i32) {
    %c0_i32 = arith.constant 0 : i32
    %c0_i32_0 = arith.constant 0 : i32
    return %c0_i32, %arg0 : i32, i32
  }
}

module attributes {stable_mosaic.version = 11 : i64} {
  func.func @conv_act_stats_kernel(%arg0: i32, %arg1: memref<72x256xbf16, #tpu.memory_space<vmem>>, %arg2: memref<16x72xbf16, #tpu.memory_space<vmem>>, %arg3: memref<16x1xf32, #tpu.memory_space<vmem>>, %arg4: memref<16x256xf32, #tpu.memory_space<vmem>>, %arg5: memref<1x16x2xf32, #tpu.memory_space<vmem>>) attributes {dimension_semantics = [#tpu.dimension_semantics<parallel>], iteration_bounds = array<i64: 1>, scalar_prefetch = 0 : i64, scratch_operands = 0 : i64, tpu.core_type = #tpu.core_type<tc>, window_params = [{transform_indices = @transform_0, window_bounds = array<i64: 72, 256>}, {pipeline_mode = #tpu.pipeline_mode<synchronous>, transform_indices = @transform_1, window_bounds = array<i64: 16, 72>}, {pipeline_mode = #tpu.pipeline_mode<synchronous>, transform_indices = @transform_2, window_bounds = array<i64: 16, 1>}, {transform_indices = @transform_3, window_bounds = array<i64: 16, 256>}, {transform_indices = @transform_4, window_bounds = array<i64: 1, 16, 2>}]} {
    %c0 = arith.constant 0 : index
    %c0_0 = arith.constant 0 : index
    %0 = vector.load %arg2[%c0, %c0_0] : memref<16x72xbf16, #tpu.memory_space<vmem>>, vector<16x72xbf16>
    %c0_1 = arith.constant 0 : index
    %c0_2 = arith.constant 0 : index
    %1 = vector.load %arg1[%c0_1, %c0_2] : memref<72x256xbf16, #tpu.memory_space<vmem>>, vector<72x256xbf16>
    %cst = arith.constant dense<0.000000e+00> : vector<16x256xf32>
    %2 = tpu.matmul %0, %1, %cst {dimension_numbers = #tpu.dot_dimension_numbers<[1], [0], [0], [1], [0, 0, 1, 1], [], []>} : vector<16x72xbf16>, vector<72x256xbf16>, vector<16x256xf32> -> vector<16x256xf32>
    %c0_3 = arith.constant 0 : index
    %c0_4 = arith.constant 0 : index
    %3 = vector.load %arg3[%c0_3, %c0_4] : memref<16x1xf32, #tpu.memory_space<vmem>>, vector<16x1xf32>
    %4 = vector.broadcast %3 : vector<16x1xf32> to vector<16x256xf32>
    %5 = arith.addf %2, %4 : vector<16x256xf32>
    %cst_5 = arith.constant 2.000000e-01 : f32
    %6 = vector.broadcast %cst_5 : f32 to vector<16x256xf32>
    %7 = arith.mulf %6, %5 : vector<16x256xf32>
    %8 = arith.maximumf %5, %7 : vector<16x256xf32>
    %c0_6 = arith.constant 0 : index
    %c0_7 = arith.constant 0 : index
    %9 = vector.load %arg4[%c0_6, %c0_7] : memref<16x256xf32, #tpu.memory_space<vmem>>, vector<16x256xf32>
    tpu.vector_store %arg4[%c0_6, %c0_7], %8 {strides = array<i32>} : memref<16x256xf32, #tpu.memory_space<vmem>>, vector<16x256xf32>,
    %cst_8 = arith.constant dense<0.000000e+00> : vector<16xf32>
    %10 = vector.multi_reduction <add>, %8, %cst_8 [1] : vector<16x256xf32> to vector<16xf32>
    %11 = vector.shape_cast %10 : vector<16xf32> to vector<16x1xf32>
    %c0_9 = arith.constant 0 : index
    %c0_10 = arith.constant 0 : index
    %c0_11 = arith.constant 0 : index
    %12 = vector.load %arg5[%c0_9, %c0_10, %c0_11] : memref<1x16x2xf32, #tpu.memory_space<vmem>>, vector<1x16x1xf32>
    %13 = vector.shape_cast %12 : vector<1x16x1xf32> to vector<16x1xf32>
    %14 = vector.shape_cast %11 : vector<16x1xf32> to vector<1x16x1xf32>
    tpu.vector_store %arg5[%c0_9, %c0_10, %c0_11], %14 {strides = array<i32>} : memref<1x16x2xf32, #tpu.memory_space<vmem>>, vector<1x16x1xf32>,
    %15 = arith.mulf %8, %8 : vector<16x256xf32>
    %cst_12 = arith.constant dense<0.000000e+00> : vector<16xf32>
    %16 = vector.multi_reduction <add>, %15, %cst_12 [1] : vector<16x256xf32> to vector<16xf32>
    %17 = vector.shape_cast %16 : vector<16xf32> to vector<16x1xf32>
    %c0_13 = arith.constant 0 : index
    %c0_14 = arith.constant 0 : index
    %c1 = arith.constant 1 : index
    %18 = vector.load %arg5[%c0_13, %c0_14, %c1] : memref<1x16x2xf32, #tpu.memory_space<vmem>>, vector<1x16x1xf32>
    %19 = vector.shape_cast %18 : vector<1x16x1xf32> to vector<16x1xf32>
    %20 = vector.shape_cast %17 : vector<16x1xf32> to vector<1x16x1xf32>
    tpu.vector_store %arg5[%c0_13, %c0_14, %c1], %20 {strides = array<i32>} : memref<1x16x2xf32, #tpu.memory_space<vmem>>, vector<1x16x1xf32>,
    return
  }
  func.func @transform_0(%arg0: i32) -> (i32, i32) {
    %c0_i32 = arith.constant 0 : i32
    %c0_i32_0 = arith.constant 0 : i32
    return %c0_i32, %arg0 : i32, i32
  }
  func.func @transform_1(%arg0: i32) -> (i32, i32) {
    %c0_i32 = arith.constant 0 : i32
    %c0_i32_0 = arith.constant 0 : i32
    %c0_i32_1 = arith.constant 0 : i32
    return %c0_i32, %c0_i32_0 : i32, i32
  }
  func.func @transform_2(%arg0: i32) -> (i32, i32) {
    %c0_i32 = arith.constant 0 : i32
    %c0_i32_0 = arith.constant 0 : i32
    %c0_i32_1 = arith.constant 0 : i32
    return %c0_i32, %c0_i32_0 : i32, i32
  }
  func.func @transform_3(%arg0: i32) -> (i32, i32) {
    %c0_i32 = arith.constant 0 : i32
    %c0_i32_0 = arith.constant 0 : i32
    return %c0_i32, %arg0 : i32, i32
  }
  func.func @transform_4(%arg0: i32) -> (i32, i32, i32) {
    %c0_i32 = arith.constant 0 : i32
    %c0_i32_0 = arith.constant 0 : i32
    %c0_i32_1 = arith.constant 0 : i32
    return %arg0, %c0_i32, %c0_i32_0 : i32, i32, i32
  }
}

module attributes {stable_mosaic.version = 11 : i64} {
  func.func @bn_norm_kernel(%arg0: i32, %arg1: memref<16x256xf32, #tpu.memory_space<vmem>>, %arg2: memref<16x2xf32, #tpu.memory_space<vmem>>, %arg3: memref<16x256xbf16, #tpu.memory_space<vmem>>) attributes {dimension_semantics = [#tpu.dimension_semantics<parallel>], iteration_bounds = array<i64: 1>, scalar_prefetch = 0 : i64, scratch_operands = 0 : i64, tpu.core_type = #tpu.core_type<tc>, window_params = [{transform_indices = @transform_0, window_bounds = array<i64: 16, 256>}, {pipeline_mode = #tpu.pipeline_mode<synchronous>, transform_indices = @transform_1, window_bounds = array<i64: 16, 2>}, {transform_indices = @transform_2, window_bounds = array<i64: 16, 256>}]} {
    %c0 = arith.constant 0 : index
    %c0_0 = arith.constant 0 : index
    %0 = vector.load %arg1[%c0, %c0_0] : memref<16x256xf32, #tpu.memory_space<vmem>>, vector<16x256xf32>
    %c0_1 = arith.constant 0 : index
    %c0_2 = arith.constant 0 : index
    %1 = vector.load %arg2[%c0_1, %c0_2] : memref<16x2xf32, #tpu.memory_space<vmem>>, vector<16x1xf32>
    %2 = vector.broadcast %1 : vector<16x1xf32> to vector<16x256xf32>
    %3 = arith.subf %0, %2 : vector<16x256xf32>
    %c0_3 = arith.constant 0 : index
    %c1 = arith.constant 1 : index
    %4 = vector.load %arg2[%c0_3, %c1] : memref<16x2xf32, #tpu.memory_space<vmem>>, vector<16x1xf32>
    %5 = vector.broadcast %4 : vector<16x1xf32> to vector<16x256xf32>
    %6 = arith.mulf %3, %5 : vector<16x256xf32>
    %7 = arith.truncf %6 : vector<16x256xf32> to vector<16x256xbf16>
    %c0_4 = arith.constant 0 : index
    %c0_5 = arith.constant 0 : index
    %8 = vector.load %arg3[%c0_4, %c0_5] : memref<16x256xbf16, #tpu.memory_space<vmem>>, vector<16x256xbf16>
    tpu.vector_store %arg3[%c0_4, %c0_5], %7 {strides = array<i32>} : memref<16x256xbf16, #tpu.memory_space<vmem>>, vector<16x256xbf16>,
    return
  }
  func.func @transform_0(%arg0: i32) -> (i32, i32) {
    %c0_i32 = arith.constant 0 : i32
    %c0_i32_0 = arith.constant 0 : i32
    return %c0_i32, %arg0 : i32, i32
  }
  func.func @transform_1(%arg0: i32) -> (i32, i32) {
    %c0_i32 = arith.constant 0 : i32
    %c0_i32_0 = arith.constant 0 : i32
    %c0_i32_1 = arith.constant 0 : i32
    return %c0_i32, %c0_i32_0 : i32, i32
  }
  func.func @transform_2(%arg0: i32) -> (i32, i32) {
    %c0_i32 = arith.constant 0 : i32
    %c0_i32_0 = arith.constant 0 : i32
    return %c0_i32, %arg0 : i32, i32
  }
}

module attributes {stable_mosaic.version = 11 : i64} {
  func.func @bottleneck_kernel(%arg0: memref<16x256xbf16, #tpu.memory_space<vmem>>, %arg1: memref<256x64xbf16, #tpu.memory_space<vmem>>, %arg2: memref<1x64xf32, #tpu.memory_space<vmem>>, %arg3: memref<16x32xf32, #tpu.memory_space<vmem>>, %arg4: memref<32x256xbf16, #tpu.memory_space<vmem>>, %arg5: memref<1x256xf32, #tpu.memory_space<vmem>>, %arg6: memref<16x64xf32, #tpu.memory_space<vmem>>, %arg7: memref<16x256xbf16, #tpu.memory_space<vmem>>) attributes {dimension_semantics = [], scalar_prefetch = 0 : i64, scratch_operands = 0 : i64, tpu.core_type = #tpu.core_type<tc>} {
    %c0 = arith.constant 0 : index
    %c0_0 = arith.constant 0 : index
    %0 = vector.load %arg0[%c0, %c0_0] : memref<16x256xbf16, #tpu.memory_space<vmem>>, vector<16x256xbf16>
    %c0_1 = arith.constant 0 : index
    %c0_2 = arith.constant 0 : index
    %1 = vector.load %arg1[%c0_1, %c0_2] : memref<256x64xbf16, #tpu.memory_space<vmem>>, vector<256x64xbf16>
    %cst = arith.constant dense<0.000000e+00> : vector<16x64xf32>
    %2 = tpu.matmul %0, %1, %cst {dimension_numbers = #tpu.dot_dimension_numbers<[1], [0], [0], [1], [0, 0, 1, 1], [], []>} : vector<16x256xbf16>, vector<256x64xbf16>, vector<16x64xf32> -> vector<16x64xf32>
    %c0_3 = arith.constant 0 : index
    %c0_4 = arith.constant 0 : index
    %3 = vector.load %arg2[%c0_3, %c0_4] : memref<1x64xf32, #tpu.memory_space<vmem>>, vector<1x64xf32>
    %4 = vector.broadcast %3 : vector<1x64xf32> to vector<16x64xf32>
    %5 = arith.addf %2, %4 : vector<16x64xf32>
    %c0_5 = arith.constant 0 : index
    %c0_6 = arith.constant 0 : index
    %6 = vector.load %arg6[%c0_5, %c0_6] : memref<16x64xf32, #tpu.memory_space<vmem>>, vector<16x64xf32>
    tpu.vector_store %arg6[%c0_5, %c0_6], %5 {strides = array<i32>} : memref<16x64xf32, #tpu.memory_space<vmem>>, vector<16x64xf32>,
    %7 = vector.extract_strided_slice %5 {offsets = [0, 0], sizes = [16, 32], strides = [1, 1]} : vector<16x64xf32> to vector<16x32xf32>
    %8 = vector.extract_strided_slice %5 {offsets = [0, 32], sizes = [16, 32], strides = [1, 1]} : vector<16x64xf32> to vector<16x32xf32>
    %cst_7 = arith.constant 5.000000e-01 : f32
    %9 = vector.broadcast %cst_7 : f32 to vector<16x32xf32>
    %10 = arith.mulf %9, %8 : vector<16x32xf32>
    %11 = math.exp %10 : vector<16x32xf32>
    %c0_8 = arith.constant 0 : index
    %c0_9 = arith.constant 0 : index
    %12 = vector.load %arg3[%c0_8, %c0_9] : memref<16x32xf32, #tpu.memory_space<vmem>>, vector<16x32xf32>
    %13 = arith.mulf %11, %12 : vector<16x32xf32>
    %14 = arith.addf %7, %13 : vector<16x32xf32>
    %15 = arith.truncf %14 : vector<16x32xf32> to vector<16x32xbf16>
    %c0_10 = arith.constant 0 : index
    %c0_11 = arith.constant 0 : index
    %16 = vector.load %arg4[%c0_10, %c0_11] : memref<32x256xbf16, #tpu.memory_space<vmem>>, vector<32x256xbf16>
    %cst_12 = arith.constant dense<0.000000e+00> : vector<16x256xf32>
    %17 = tpu.matmul %15, %16, %cst_12 {dimension_numbers = #tpu.dot_dimension_numbers<[1], [0], [0], [1], [0, 0, 1, 1], [], []>} : vector<16x32xbf16>, vector<32x256xbf16>, vector<16x256xf32> -> vector<16x256xf32>
    %c0_13 = arith.constant 0 : index
    %c0_14 = arith.constant 0 : index
    %18 = vector.load %arg5[%c0_13, %c0_14] : memref<1x256xf32, #tpu.memory_space<vmem>>, vector<1x256xf32>
    %19 = vector.broadcast %18 : vector<1x256xf32> to vector<16x256xf32>
    %20 = arith.addf %17, %19 : vector<16x256xf32>
    %21 = arith.truncf %20 : vector<16x256xf32> to vector<16x256xbf16>
    %c0_15 = arith.constant 0 : index
    %c0_16 = arith.constant 0 : index
    %22 = vector.load %arg7[%c0_15, %c0_16] : memref<16x256xbf16, #tpu.memory_space<vmem>>, vector<16x256xbf16>
    tpu.vector_store %arg7[%c0_15, %c0_16], %21 {strides = array<i32>} : memref<16x256xbf16, #tpu.memory_space<vmem>>, vector<16x256xbf16>,
    return
  }
}

module attributes {stable_mosaic.version = 11 : i64} {
  func.func @conv_act_stats_kernel(%arg0: i32, %arg1: memref<144x256xbf16, #tpu.memory_space<vmem>>, %arg2: memref<32x144xbf16, #tpu.memory_space<vmem>>, %arg3: memref<32x1xf32, #tpu.memory_space<vmem>>, %arg4: memref<32x256xf32, #tpu.memory_space<vmem>>, %arg5: memref<1x32x2xf32, #tpu.memory_space<vmem>>) attributes {dimension_semantics = [#tpu.dimension_semantics<parallel>], iteration_bounds = array<i64: 1>, scalar_prefetch = 0 : i64, scratch_operands = 0 : i64, tpu.core_type = #tpu.core_type<tc>, window_params = [{transform_indices = @transform_0, window_bounds = array<i64: 144, 256>}, {pipeline_mode = #tpu.pipeline_mode<synchronous>, transform_indices = @transform_1, window_bounds = array<i64: 32, 144>}, {pipeline_mode = #tpu.pipeline_mode<synchronous>, transform_indices = @transform_2, window_bounds = array<i64: 32, 1>}, {transform_indices = @transform_3, window_bounds = array<i64: 32, 256>}, {transform_indices = @transform_4, window_bounds = array<i64: 1, 32, 2>}]} {
    %c0 = arith.constant 0 : index
    %c0_0 = arith.constant 0 : index
    %0 = vector.load %arg2[%c0, %c0_0] : memref<32x144xbf16, #tpu.memory_space<vmem>>, vector<32x144xbf16>
    %c0_1 = arith.constant 0 : index
    %c0_2 = arith.constant 0 : index
    %1 = vector.load %arg1[%c0_1, %c0_2] : memref<144x256xbf16, #tpu.memory_space<vmem>>, vector<144x256xbf16>
    %cst = arith.constant dense<0.000000e+00> : vector<32x256xf32>
    %2 = tpu.matmul %0, %1, %cst {dimension_numbers = #tpu.dot_dimension_numbers<[1], [0], [0], [1], [0, 0, 1, 1], [], []>} : vector<32x144xbf16>, vector<144x256xbf16>, vector<32x256xf32> -> vector<32x256xf32>
    %c0_3 = arith.constant 0 : index
    %c0_4 = arith.constant 0 : index
    %3 = vector.load %arg3[%c0_3, %c0_4] : memref<32x1xf32, #tpu.memory_space<vmem>>, vector<32x1xf32>
    %4 = vector.broadcast %3 : vector<32x1xf32> to vector<32x256xf32>
    %5 = arith.addf %2, %4 : vector<32x256xf32>
    %cst_5 = arith.constant 2.000000e-01 : f32
    %6 = vector.broadcast %cst_5 : f32 to vector<32x256xf32>
    %7 = arith.mulf %6, %5 : vector<32x256xf32>
    %8 = arith.maximumf %5, %7 : vector<32x256xf32>
    %c0_6 = arith.constant 0 : index
    %c0_7 = arith.constant 0 : index
    %9 = vector.load %arg4[%c0_6, %c0_7] : memref<32x256xf32, #tpu.memory_space<vmem>>, vector<32x256xf32>
    tpu.vector_store %arg4[%c0_6, %c0_7], %8 {strides = array<i32>} : memref<32x256xf32, #tpu.memory_space<vmem>>, vector<32x256xf32>,
    %cst_8 = arith.constant dense<0.000000e+00> : vector<32xf32>
    %10 = vector.multi_reduction <add>, %8, %cst_8 [1] : vector<32x256xf32> to vector<32xf32>
    %11 = vector.shape_cast %10 : vector<32xf32> to vector<32x1xf32>
    %c0_9 = arith.constant 0 : index
    %c0_10 = arith.constant 0 : index
    %c0_11 = arith.constant 0 : index
    %12 = vector.load %arg5[%c0_9, %c0_10, %c0_11] : memref<1x32x2xf32, #tpu.memory_space<vmem>>, vector<1x32x1xf32>
    %13 = vector.shape_cast %12 : vector<1x32x1xf32> to vector<32x1xf32>
    %14 = vector.shape_cast %11 : vector<32x1xf32> to vector<1x32x1xf32>
    tpu.vector_store %arg5[%c0_9, %c0_10, %c0_11], %14 {strides = array<i32>} : memref<1x32x2xf32, #tpu.memory_space<vmem>>, vector<1x32x1xf32>,
    %15 = arith.mulf %8, %8 : vector<32x256xf32>
    %cst_12 = arith.constant dense<0.000000e+00> : vector<32xf32>
    %16 = vector.multi_reduction <add>, %15, %cst_12 [1] : vector<32x256xf32> to vector<32xf32>
    %17 = vector.shape_cast %16 : vector<32xf32> to vector<32x1xf32>
    %c0_13 = arith.constant 0 : index
    %c0_14 = arith.constant 0 : index
    %c1 = arith.constant 1 : index
    %18 = vector.load %arg5[%c0_13, %c0_14, %c1] : memref<1x32x2xf32, #tpu.memory_space<vmem>>, vector<1x32x1xf32>
    %19 = vector.shape_cast %18 : vector<1x32x1xf32> to vector<32x1xf32>
    %20 = vector.shape_cast %17 : vector<32x1xf32> to vector<1x32x1xf32>
    tpu.vector_store %arg5[%c0_13, %c0_14, %c1], %20 {strides = array<i32>} : memref<1x32x2xf32, #tpu.memory_space<vmem>>, vector<1x32x1xf32>,
    return
  }
  func.func @transform_0(%arg0: i32) -> (i32, i32) {
    %c0_i32 = arith.constant 0 : i32
    %c0_i32_0 = arith.constant 0 : i32
    return %c0_i32, %arg0 : i32, i32
  }
  func.func @transform_1(%arg0: i32) -> (i32, i32) {
    %c0_i32 = arith.constant 0 : i32
    %c0_i32_0 = arith.constant 0 : i32
    %c0_i32_1 = arith.constant 0 : i32
    return %c0_i32, %c0_i32_0 : i32, i32
  }
  func.func @transform_2(%arg0: i32) -> (i32, i32) {
    %c0_i32 = arith.constant 0 : i32
    %c0_i32_0 = arith.constant 0 : i32
    %c0_i32_1 = arith.constant 0 : i32
    return %c0_i32, %c0_i32_0 : i32, i32
  }
  func.func @transform_3(%arg0: i32) -> (i32, i32) {
    %c0_i32 = arith.constant 0 : i32
    %c0_i32_0 = arith.constant 0 : i32
    return %c0_i32, %arg0 : i32, i32
  }
  func.func @transform_4(%arg0: i32) -> (i32, i32, i32) {
    %c0_i32 = arith.constant 0 : i32
    %c0_i32_0 = arith.constant 0 : i32
    %c0_i32_1 = arith.constant 0 : i32
    return %arg0, %c0_i32, %c0_i32_0 : i32, i32, i32
  }
}

module attributes {stable_mosaic.version = 11 : i64} {
  func.func @bn_norm_kernel(%arg0: i32, %arg1: memref<32x256xf32, #tpu.memory_space<vmem>>, %arg2: memref<32x2xf32, #tpu.memory_space<vmem>>, %arg3: memref<32x256xbf16, #tpu.memory_space<vmem>>) attributes {dimension_semantics = [#tpu.dimension_semantics<parallel>], iteration_bounds = array<i64: 1>, scalar_prefetch = 0 : i64, scratch_operands = 0 : i64, tpu.core_type = #tpu.core_type<tc>, window_params = [{transform_indices = @transform_0, window_bounds = array<i64: 32, 256>}, {pipeline_mode = #tpu.pipeline_mode<synchronous>, transform_indices = @transform_1, window_bounds = array<i64: 32, 2>}, {transform_indices = @transform_2, window_bounds = array<i64: 32, 256>}]} {
    %c0 = arith.constant 0 : index
    %c0_0 = arith.constant 0 : index
    %0 = vector.load %arg1[%c0, %c0_0] : memref<32x256xf32, #tpu.memory_space<vmem>>, vector<32x256xf32>
    %c0_1 = arith.constant 0 : index
    %c0_2 = arith.constant 0 : index
    %1 = vector.load %arg2[%c0_1, %c0_2] : memref<32x2xf32, #tpu.memory_space<vmem>>, vector<32x1xf32>
    %2 = vector.broadcast %1 : vector<32x1xf32> to vector<32x256xf32>
    %3 = arith.subf %0, %2 : vector<32x256xf32>
    %c0_3 = arith.constant 0 : index
    %c1 = arith.constant 1 : index
    %4 = vector.load %arg2[%c0_3, %c1] : memref<32x2xf32, #tpu.memory_space<vmem>>, vector<32x1xf32>
    %5 = vector.broadcast %4 : vector<32x1xf32> to vector<32x256xf32>
    %6 = arith.mulf %3, %5 : vector<32x256xf32>
    %7 = arith.truncf %6 : vector<32x256xf32> to vector<32x256xbf16>
    %c0_4 = arith.constant 0 : index
    %c0_5 = arith.constant 0 : index
    %8 = vector.load %arg3[%c0_4, %c0_5] : memref<32x256xbf16, #tpu.memory_space<vmem>>, vector<32x256xbf16>
    tpu.vector_store %arg3[%c0_4, %c0_5], %7 {strides = array<i32>} : memref<32x256xbf16, #tpu.memory_space<vmem>>, vector<32x256xbf16>,
    return
  }
  func.func @transform_0(%arg0: i32) -> (i32, i32) {
    %c0_i32 = arith.constant 0 : i32
    %c0_i32_0 = arith.constant 0 : i32
    return %c0_i32, %arg0 : i32, i32
  }
  func.func @transform_1(%arg0: i32) -> (i32, i32) {
    %c0_i32 = arith.constant 0 : i32
    %c0_i32_0 = arith.constant 0 : i32
    %c0_i32_1 = arith.constant 0 : i32
    return %c0_i32, %c0_i32_0 : i32, i32
  }
  func.func @transform_2(%arg0: i32) -> (i32, i32) {
    %c0_i32 = arith.constant 0 : i32
    %c0_i32_0 = arith.constant 0 : i32
    return %c0_i32, %arg0 : i32, i32
  }
}

module attributes {stable_mosaic.version = 11 : i64} {
  func.func @conv_act_stats_kernel(%arg0: i32, %arg1: memref<72x512xbf16, #tpu.memory_space<vmem>>, %arg2: memref<16x72xbf16, #tpu.memory_space<vmem>>, %arg3: memref<16x1xf32, #tpu.memory_space<vmem>>, %arg4: memref<16x512xf32, #tpu.memory_space<vmem>>, %arg5: memref<1x16x2xf32, #tpu.memory_space<vmem>>) attributes {dimension_semantics = [#tpu.dimension_semantics<parallel>], iteration_bounds = array<i64: 2>, scalar_prefetch = 0 : i64, scratch_operands = 0 : i64, tpu.core_type = #tpu.core_type<tc>, window_params = [{transform_indices = @transform_0, window_bounds = array<i64: 72, 512>}, {pipeline_mode = #tpu.pipeline_mode<synchronous>, transform_indices = @transform_1, window_bounds = array<i64: 16, 72>}, {pipeline_mode = #tpu.pipeline_mode<synchronous>, transform_indices = @transform_2, window_bounds = array<i64: 16, 1>}, {transform_indices = @transform_3, window_bounds = array<i64: 16, 512>}, {transform_indices = @transform_4, window_bounds = array<i64: 1, 16, 2>}]} {
    %c0 = arith.constant 0 : index
    %c0_0 = arith.constant 0 : index
    %0 = vector.load %arg2[%c0, %c0_0] : memref<16x72xbf16, #tpu.memory_space<vmem>>, vector<16x72xbf16>
    %c0_1 = arith.constant 0 : index
    %c0_2 = arith.constant 0 : index
    %1 = vector.load %arg1[%c0_1, %c0_2] : memref<72x512xbf16, #tpu.memory_space<vmem>>, vector<72x512xbf16>
    %cst = arith.constant dense<0.000000e+00> : vector<16x512xf32>
    %2 = tpu.matmul %0, %1, %cst {dimension_numbers = #tpu.dot_dimension_numbers<[1], [0], [0], [1], [0, 0, 1, 1], [], []>} : vector<16x72xbf16>, vector<72x512xbf16>, vector<16x512xf32> -> vector<16x512xf32>
    %c0_3 = arith.constant 0 : index
    %c0_4 = arith.constant 0 : index
    %3 = vector.load %arg3[%c0_3, %c0_4] : memref<16x1xf32, #tpu.memory_space<vmem>>, vector<16x1xf32>
    %4 = vector.broadcast %3 : vector<16x1xf32> to vector<16x512xf32>
    %5 = arith.addf %2, %4 : vector<16x512xf32>
    %cst_5 = arith.constant 2.000000e-01 : f32
    %6 = vector.broadcast %cst_5 : f32 to vector<16x512xf32>
    %7 = arith.mulf %6, %5 : vector<16x512xf32>
    %8 = arith.maximumf %5, %7 : vector<16x512xf32>
    %c0_6 = arith.constant 0 : index
    %c0_7 = arith.constant 0 : index
    %9 = vector.load %arg4[%c0_6, %c0_7] : memref<16x512xf32, #tpu.memory_space<vmem>>, vector<16x512xf32>
    tpu.vector_store %arg4[%c0_6, %c0_7], %8 {strides = array<i32>} : memref<16x512xf32, #tpu.memory_space<vmem>>, vector<16x512xf32>,
    %cst_8 = arith.constant dense<0.000000e+00> : vector<16xf32>
    %10 = vector.multi_reduction <add>, %8, %cst_8 [1] : vector<16x512xf32> to vector<16xf32>
    %11 = vector.shape_cast %10 : vector<16xf32> to vector<16x1xf32>
    %c0_9 = arith.constant 0 : index
    %c0_10 = arith.constant 0 : index
    %c0_11 = arith.constant 0 : index
    %12 = vector.load %arg5[%c0_9, %c0_10, %c0_11] : memref<1x16x2xf32, #tpu.memory_space<vmem>>, vector<1x16x1xf32>
    %13 = vector.shape_cast %12 : vector<1x16x1xf32> to vector<16x1xf32>
    %14 = vector.shape_cast %11 : vector<16x1xf32> to vector<1x16x1xf32>
    tpu.vector_store %arg5[%c0_9, %c0_10, %c0_11], %14 {strides = array<i32>} : memref<1x16x2xf32, #tpu.memory_space<vmem>>, vector<1x16x1xf32>,
    %15 = arith.mulf %8, %8 : vector<16x512xf32>
    %cst_12 = arith.constant dense<0.000000e+00> : vector<16xf32>
    %16 = vector.multi_reduction <add>, %15, %cst_12 [1] : vector<16x512xf32> to vector<16xf32>
    %17 = vector.shape_cast %16 : vector<16xf32> to vector<16x1xf32>
    %c0_13 = arith.constant 0 : index
    %c0_14 = arith.constant 0 : index
    %c1 = arith.constant 1 : index
    %18 = vector.load %arg5[%c0_13, %c0_14, %c1] : memref<1x16x2xf32, #tpu.memory_space<vmem>>, vector<1x16x1xf32>
    %19 = vector.shape_cast %18 : vector<1x16x1xf32> to vector<16x1xf32>
    %20 = vector.shape_cast %17 : vector<16x1xf32> to vector<1x16x1xf32>
    tpu.vector_store %arg5[%c0_13, %c0_14, %c1], %20 {strides = array<i32>} : memref<1x16x2xf32, #tpu.memory_space<vmem>>, vector<1x16x1xf32>,
    return
  }
  func.func @transform_0(%arg0: i32) -> (i32, i32) {
    %c0_i32 = arith.constant 0 : i32
    %c0_i32_0 = arith.constant 0 : i32
    return %c0_i32, %arg0 : i32, i32
  }
  func.func @transform_1(%arg0: i32) -> (i32, i32) {
    %c0_i32 = arith.constant 0 : i32
    %c0_i32_0 = arith.constant 0 : i32
    %c0_i32_1 = arith.constant 0 : i32
    return %c0_i32, %c0_i32_0 : i32, i32
  }
  func.func @transform_2(%arg0: i32) -> (i32, i32) {
    %c0_i32 = arith.constant 0 : i32
    %c0_i32_0 = arith.constant 0 : i32
    %c0_i32_1 = arith.constant 0 : i32
    return %c0_i32, %c0_i32_0 : i32, i32
  }
  func.func @transform_3(%arg0: i32) -> (i32, i32) {
    %c0_i32 = arith.constant 0 : i32
    %c0_i32_0 = arith.constant 0 : i32
    return %c0_i32, %arg0 : i32, i32
  }
  func.func @transform_4(%arg0: i32) -> (i32, i32, i32) {
    %c0_i32 = arith.constant 0 : i32
    %c0_i32_0 = arith.constant 0 : i32
    %c0_i32_1 = arith.constant 0 : i32
    return %arg0, %c0_i32, %c0_i32_0 : i32, i32, i32
  }
}

module attributes {stable_mosaic.version = 11 : i64} {
  func.func @bn_norm_kernel(%arg0: i32, %arg1: memref<16x512xf32, #tpu.memory_space<vmem>>, %arg2: memref<16x2xf32, #tpu.memory_space<vmem>>, %arg3: memref<16x512xf32, #tpu.memory_space<vmem>>) attributes {dimension_semantics = [#tpu.dimension_semantics<parallel>], iteration_bounds = array<i64: 2>, scalar_prefetch = 0 : i64, scratch_operands = 0 : i64, tpu.core_type = #tpu.core_type<tc>, window_params = [{transform_indices = @transform_0, window_bounds = array<i64: 16, 512>}, {pipeline_mode = #tpu.pipeline_mode<synchronous>, transform_indices = @transform_1, window_bounds = array<i64: 16, 2>}, {transform_indices = @transform_2, window_bounds = array<i64: 16, 512>}]} {
    %c0 = arith.constant 0 : index
    %c0_0 = arith.constant 0 : index
    %0 = vector.load %arg1[%c0, %c0_0] : memref<16x512xf32, #tpu.memory_space<vmem>>, vector<16x512xf32>
    %c0_1 = arith.constant 0 : index
    %c0_2 = arith.constant 0 : index
    %1 = vector.load %arg2[%c0_1, %c0_2] : memref<16x2xf32, #tpu.memory_space<vmem>>, vector<16x1xf32>
    %2 = vector.broadcast %1 : vector<16x1xf32> to vector<16x512xf32>
    %3 = arith.subf %0, %2 : vector<16x512xf32>
    %c0_3 = arith.constant 0 : index
    %c1 = arith.constant 1 : index
    %4 = vector.load %arg2[%c0_3, %c1] : memref<16x2xf32, #tpu.memory_space<vmem>>, vector<16x1xf32>
    %5 = vector.broadcast %4 : vector<16x1xf32> to vector<16x512xf32>
    %6 = arith.mulf %3, %5 : vector<16x512xf32>
    %7 = arith.negf %6 : vector<16x512xf32>
    %8 = math.exp %7 : vector<16x512xf32>
    %cst = arith.constant 1.000000e+00 : f32
    %9 = vector.broadcast %cst : f32 to vector<16x512xf32>
    %10 = arith.addf %9, %8 : vector<16x512xf32>
    %11 = arith.divf %9, %10 : vector<16x512xf32>
    %c0_4 = arith.constant 0 : index
    %c0_5 = arith.constant 0 : index
    %12 = vector.load %arg3[%c0_4, %c0_5] : memref<16x512xf32, #tpu.memory_space<vmem>>, vector<16x512xf32>
    tpu.vector_store %arg3[%c0_4, %c0_5], %11 {strides = array<i32>} : memref<16x512xf32, #tpu.memory_space<vmem>>, vector<16x512xf32>,
    return
  }
  func.func @transform_0(%arg0: i32) -> (i32, i32) {
    %c0_i32 = arith.constant 0 : i32
    %c0_i32_0 = arith.constant 0 : i32
    return %c0_i32, %arg0 : i32, i32
  }
  func.func @transform_1(%arg0: i32) -> (i32, i32) {
    %c0_i32 = arith.constant 0 : i32
    %c0_i32_0 = arith.constant 0 : i32
    %c0_i32_1 = arith.constant 0 : i32
    return %c0_i32, %c0_i32_0 : i32, i32
  }
  func.func @transform_2(%arg0: i32) -> (i32, i32) {
    %c0_i32 = arith.constant 0 : i32
    %c0_i32_0 = arith.constant 0 : i32
    return %c0_i32, %arg0 : i32, i32
  }
}

</mosaic_0001>

<bundles_post_ra>
// kernel: vae_forward.10
= control target key start
LH: loop header
LB: loop body
LE: loop exit
PB: predicated region body
PF: predicated region fallthrough
CT: control target
= control target key end

     0   :  { %s295_s9 = smov 0   ;;  %s315_s0 = inlined_call_operand.vmem [shape: f32[8,1024], index: 0, kind: input, shape index: {}]   ;;  %s316_s1 = inlined_call_operand.vmem [shape: f32[8,2], index: 1, kind: input, shape index: {}]   ;;  %s317_s2 = inlined_call_operand.vmem [shape: bf16[8,1024], index: 2, kind: output, shape index: {}]  }
   0x1 LB: > { %s243_s10 = sadd.s32 4294967295, %s276_s9   ;;  %p247_p0 = scmp.ge.s32.totalorder %s276_s9, 1  ;;  %s276_s9 = sphi %s295_s9, %s12_s9  }
   0x2   : > { %p113_p1 = scmp.lt.s32.totalorder %s276_s9, 3 }
   0x4   : > { %p114_p2 = pnand %p247_p0, %p113_p1 }
   0x5   : > { %v151_v0 = vld [vmem:[%s316_s1] sm:$0xff] (!%p114_p2)  ;;  %v278_v1 = vmov (!%p114_p2), 0   ;;  %v279_v2 = vmov (!%p114_p2), 1   ;;  %s248_s13 = sshll.u32 (!%p114_p2), %s243_s10, 2 }
   0x6   : > { %117 = sbr.rel (%p114_p2) target bundleno = 145 (0x91), region = 28  ;;  %268 = vset.pattern.permute.xlu0 (!%p114_p2), %v278_v1  ;;  %p136_p3 = scmp.lt.s32.totalorder (!%p114_p2), %s248_s13, 7 }
   0x7   : > { %154 = vperm.xlu0 (!%p114_p2), %268, %v151_v0  }
   0xb   : > { %269 = vset.pattern.permute.xlu0 (!%p114_p2), %v279_v2 }
   0xc   : > { %162 = vperm.xlu0 (!%p114_p2), %269, %v151_v0  }
   0xd   : > { %s319_s13 = smov (!%p136_p3, %s248_s13), 7 }
   0xe   : > { %s249_s14 = sshll.u32 %s319_s13, 3  ;;  %s251_s18 = sshll.u32 %s319_s13, 2 }
   0xf   : > { %s139_s17 = scalar_lea.vmem %s315_s0, %s249_s14  ;;  %s145_s21 = scalar_lea.vmem %s317_s2, %s251_s18 }
  0x10   : > { %v147_v4 = vld [vmem:[%s139_s17] sm:$0xff]  ;;  %v148_v5 = vld [vmem:[%s139_s17 + $0x8] sm:$0xff]  ;;  %v149_v6 = vld [vmem:[%s139_s17 + $0x10] sm:$0xff] }
  0x11   : > { %v150_v7 = vld [vmem:[%s139_s17 + $0x18] sm:$0xff] }
  0x86   : > { %v155_v3 = vpop.permute.xlu0 %154 }
  0x87   : > { %v157_v8 = vsub.f32 %v147_v4, %v155_v3  ;;  %v158_v9 = vsub.f32 %v148_v5, %v155_v3  ;;  %v159_v10 = vsub.f32 %v149_v6, %v155_v3  ;;  %v160_v11 = vsub.f32 %v150_v7, %v155_v3 }
  0x8b   : > { %v163_v12 = vpop.permute.xlu0 %162 }
  0x8c   : > { %v165_v13 = vmul.f32 %v163_v12, %v157_v8  ;;  %v166_v14 = vmul.f32 %v163_v12, %v158_v9  ;;  %v167_v15 = vmul.f32 %v163_v12, %v159_v10  ;;  %v168_v16 = vmul.f32 %v163_v12, %v160_v11 }
  0x8e   : > { %v256_v17 = vpack.c.bf16 %v166_v14, %v165_v13  ;;  %v257_v18 = vpack.c.bf16 %v168_v16, %v167_v15 }
  0x90   : > { %185 = vst [vmem:[%s145_s21] sm:$0xff] %v256_v17  ;;  %186 = vst [vmem:[%s145_s21 + $0x8] sm:$0xff] %v257_v18 }
  0x91 PF: > { %s12_s9 = sadd.s32 1, %s276_s9  }
  0x92   : > { %p9_p4 = scmp.ge.s32.totalorder %s12_s9, 4  }
  0x94   :  { %11 = sbr.rel (!%p9_p4) target bundleno = 1 (0x1), region = 58 }

// kernel: vae_forward.9
= control target key start
LH: loop header
LB: loop body
LE: loop exit
PB: predicated region body
PF: predicated region fallthrough
CT: control target
= control target key end

     0   :  { %s662_s15 = smov 0   ;;  %s664_s16 = smov 0   ;;  %s726_s0 = inlined_call_operand.vmem [shape: bf16[36,1024], index: 0, kind: input, shape index: {}]   ;;  %s727_s1 = inlined_call_operand.vmem [shape: bf16[8,36], index: 1, kind: input, shape index: {}]   ;;  %s728_s2 = inlined_call_operand.vmem [shape: f32[8,1], index: 2, kind: input, shape index: {}]   ;;  %s729_s3 = inlined_call_operand.vmem [shape: f32[8,1024], index: 3, kind: output, shape index: {0}]   ;;  %s730_s4 = inlined_call_operand.vmem [shape: f32[2,8,2], index: 4, kind: output, shape index: {1}]  }
   0x1   :  { %s666_s17 = smov 0  }
   0x2 LB: > { %s678_s18 = sadd.s32 4294967295, %s634_s17   ;;  %s681_s19 = sadd.s32 1, %s634_s17   ;;  %s634_s17 = sphi %s666_s17, %s733_s17   ;;  %s630_s16 = sphi %s664_s16, %s732_s16   ;;  %s626_s15 = sphi %s662_s15, %s731_s15  }
   0x3   : > { %s19_s20 = ssub.s32 %s634_s17, %s681_s19  ;;  %s22_s21 = sadd.s32 1, %s630_s16 }
   0x4   : > { %p20_p0 = scmp.eq.s32.totalorder %s19_s20, 0  ;;  %p29_p1 = scmp.ne.s32.totalorder %s630_s16, %s626_s15 }
   0x5   : > { %p30_p2 = scmp.eq.s32.totalorder %s634_s17, 0  ;;  %p542_p4 = scmp.ge.s32.totalorder %s634_s17, 2 }
   0x6   : > { %s690_s22 = scalar_select %p20_p0, %s630_s16, %s22_s21  }
   0x7   : > { %p31_p3 = por %p30_p2, %p29_p1  ;;  %155 = sbr.rel (%p542_p4) target bundleno = 23 (0x17), region = 24 }
   0xe   : > { %158 = sbr.rel (!%p31_p3) target bundleno = 23 (0x17), region = 28  ;;  %s160_s23 = sand.u32 (%p31_p3), 1, %s630_s16  }
   0xf   : > { %s567_s24 = sshll.u32 (%p31_p3), %s634_s17, 4  ;;  %s568_s25 = smul.u32 (%p31_p3), 80, %s160_s23 }
  0x10   : > { %s165_s28 = scalar_lea.vmem (%p31_p3), %s726_s0, %s567_s24 }
  0x11   : > { %v178_v0 = vld [vmem:[%s165_s28] sm:$0xff] (%p31_p3)  ;;  %v180_v1 = vld [vmem:[%s165_s28 + $0x8] sm:$0xff] (%p31_p3)  ;;  %s162_s29 = scalar_lea.vmem (%p31_p3), [#allocation2], %s568_s25 }
  0x12   : > { %v182_v2 = vld [vmem:[%s165_s28 + $0x20] sm:$0xff] (%p31_p3)  ;;  %v184_v3 = vld [vmem:[%s165_s28 + $0x28] sm:$0xff] (%p31_p3)  ;;  %179 = vst [vmem:[%s162_s29] sm:$0xff] (%p31_p3), %v178_v0  ;;  %181 = vst [vmem:[%s162_s29 + $0x8] sm:$0xff] (%p31_p3), %v180_v1 }
  0x13   : > { %v186_v4 = vld [vmem:[%s165_s28 + $0x40] sm:$0xff] (%p31_p3)  ;;  %v188_v5 = vld [vmem:[%s165_s28 + $0x48] sm:$0xff] (%p31_p3)  ;;  %183 = vst [vmem:[%s162_s29 + $0x10] sm:$0xff] (%p31_p3), %v182_v2  ;;  %185 = vst [vmem:[%s162_s29 + $0x18] sm:$0xff] (%p31_p3), %v184_v3 }
  0x14   : > { %187 = vst [vmem:[%s162_s29 + $0x20] sm:$0xff] (%p31_p3), %v186_v4  ;;  %189 = vst [vmem:[%s162_s29 + $0x28] sm:$0xff] (%p31_p3), %v188_v5  ;;  %v190_v6 = vld [vmem:[%s165_s28 + $0x60] sm:$0xff] (%p31_p3)  ;;  %v192_v7 = vld [vmem:[%s165_s28 + $0x68] sm:$0xff] (%p31_p3) }
  0x15   : > { %v194_v8 = vld [vmem:[%s165_s28 + $0x80] sm:$0xff]  ;;  %191 = vst [vmem:[%s162_s29 + $0x30] sm:$0xff] %v190_v6  ;;  %193 = vst [vmem:[%s162_s29 + $0x38] sm:$0xff] %v192_v7  ;;  %v196_v9 = vld [vmem:[%s165_s28 + $0x88] sm:$0xff] }
  0x16   : > { %195 = vst [vmem:[%s162_s29 + $0x40] sm:$0xff] %v194_v8  ;;  %197 = vst [vmem:[%s162_s29 + $0x48] sm:$0xff] %v196_v9 }
  0x17 PF: > { %p545_p5 = scmp.ge.s32.totalorder %s634_s17, 1  ;;  %p202_p6 = scmp.lt.s32.totalorder %s634_s17, 3 }
  0x19   : > { %p203_p7 = pnand %p545_p5, %p202_p6 }
  0x1a   : > { %s209_s30 = sand.u32 (!%p203_p7), 1, %s626_s15   ;;  %v636_v10 = vmov (!%p203_p7), 0   ;;  %v261_v11 = vld [vmem:[%s728_s2] sm:$0xff] (!%p203_p7)  ;;  %vm321_vm0 = vcmask (!%p203_p7), 1041408   ;;  %vm317_vm1 = vcmask (!%p203_p7), 293888   ;;  %s546_s11 = sshll.u32 (!%p203_p7), %s678_s18, 2 }
  0x1b   : > { %206 = sbr.rel (%p203_p7) target bundleno = 414 (0x19e), region = 51  ;;  %366 = vmatprep.mubr.bf16.mxu0 (!%p203_p7), %v636_v10  ;;  %407 = vmatprep.mubr.bf16.mxu1 (!%p203_p7), %v636_v10  ;;  %v250_v28 = vld [vmem:[%s727_s1] sm:$0xf] (!%p203_p7)  ;;  %p240_p8 = scmp.lt.s32.totalorder (!%p203_p7), %s546_s11, 7  ;;  %vm433_vm2 = vcmask (!%p203_p7), 7168   ;;  %vm444_vm3 = vcmask (!%p203_p7), 15368  }
  0x1c   : > { %s569_s5 = smul.u32 (!%p203_p7), 80, %s209_s30  ;;  %595 = vset.pattern.permute.xlu0 (!%p203_p7), %v636_v10  ;;  %p245_p9 = scmp.lt.s32.totalorder (!%p203_p7), %s678_s18, 1 }
  0x1d   : > { %264 = vperm.xlu0 (!%p203_p7), %595, %v261_v11  }
  0x1e   : > { %s211_s8 = scalar_lea.vmem (!%p203_p7), [#allocation2], %s569_s5 }
  0x1f   : > { %v596_v12 = vld [vmem:[%s211_s8 + $0x4] ss:$16 sps:$4 sm:$0xff] (!%p203_p7)   ;;  %v598_v13 = vld [vmem:[%s211_s8 + $0xc] ss:$16 sps:$4 sm:$0xff] (!%p203_p7)   ;;  %v600_v14 = vld [vmem:[%s211_s8] ss:$16 sps:$4 sm:$0xff] (!%p203_p7)  }
  0x20   : > { %334 = vmatprep.subr.bf16.mxu0 (!%p203_p7), %v596_v12  ;;  %v601_v15 = vld [vmem:[%s211_s8 + $0x8] ss:$16 sps:$4 sm:$0xff] (!%p203_p7)   ;;  %375 = vmatprep.subr.bf16.mxu1 (!%p203_p7), %v598_v13  ;;  %v602_v16 = vld [vmem:[%s211_s8 + $0x24] ss:$16 sps:$4 sm:$0xff] (!%p203_p7)   ;;  %v604_v17 = vld [vmem:[%s211_s8 + $0x2c] ss:$16 sps:$4 sm:$0xff] (!%p203_p7)  }
  0x21   : > { %335 = vmatpush1.bf16.msra.mxu0 (!%p203_p7), %v600_v14  ;;  %376 = vmatpush1.bf16.msra.mxu1 (!%p203_p7), %v601_v15  ;;  %v606_v18 = vld [vmem:[%s211_s8 + $0x20] ss:$16 sps:$4 sm:$0xff] (!%p203_p7)   ;;  %v607_v19 = vld [vmem:[%s211_s8 + $0x28] ss:$16 sps:$4 sm:$0xff] (!%p203_p7)  }
  0x22   : > { %336 = vmatprep.subr.bf16.mxu0 %v602_v16  ;;  %v259_v20 = vld [vmem:[%s211_s8 + $0x40] sm:$0x33]  ;;  %v260_v21 = vld [vmem:[%s211_s8 + $0x48] sm:$0x33]  ;;  %377 = vmatprep.subr.bf16.mxu1 %v604_v17  ;;  %s735_s11 = smov (!%p240_p8, %s546_s11), 7  ;;  %s737_s18 = smov (!%p245_p9, %s678_s18), 1 }
  0x23   : > { %v558_v22 = vcombine.high %v259_v20, %v259_v20  ;;  %v560_v23 = vcombine.high %v260_v21, %v260_v21  ;;  %v557_v24 = vcombine.low %v259_v20, %v259_v20  ;;  %v559_v25 = vcombine.low %v260_v21, %v260_v21  ;;  %s547_s12 = sshll.u32 %s735_s11, 3  ;;  %s548_s17 = sshll.u32 %s737_s18, 3 }
  0x24   : > { %s243_s15 = scalar_lea.vmem %s729_s3, %s547_s12  ;;  %s248_s23 = scalar_lea.vmem %s730_s4, %s548_s17 }
  0x25   : > { %337 = vmatpush1.bf16.msra.mxu0 %v606_v18  ;;  %378 = vmatpush1.bf16.msra.mxu1 %v607_v19  ;;  %v323_v26 = vsel %vm321_vm0, %v557_v24, 0  ;;  %v329_v27 = vsel %vm321_vm0, %v559_v25, 0 }
  0x26   : > { %561 = vmatprep.subr.msk.bf16.mxu0 %vm321_vm0, %v558_v22  ;;  %563 = vmatprep.subr.msk.bf16.mxu1 %vm321_vm0, %v560_v23 }
  0x29   : > { %339 = vmatpush1.bf16.msra.mxu0 %v323_v26  ;;  %380 = vmatpush1.bf16.msra.mxu1 %v329_v27 }
  0x2c   : > { %562 = vmatmul.mubr.msk.bf16.vlgmr.msra.gmra.mrb[0].mxu0 %vm317_vm1, %v250_v28  ;;  %564 = vmatmul.mubr.msk.bf16.vlgmr.msra.gmra.mrb[0].mxu1 %vm317_vm1, %v250_v28 }
  0x9c   : > { %v265_v29 = vpop.permute.xlu0 %264 }
  0xff   : > { %v368_v30 = vpop.f32.mrb[0].mxu0  ;;  %v409_v31 = vpop.f32.mrb[0].mxu1 }
 0x100   : > { %v369_v32 = vadd.f32 %v368_v30, %v265_v29  ;;  %v410_v33 = vadd.f32 %v409_v31, %v265_v29  ;;  %v370_v34 = vpop.f32.mrb[1].mxu0  ;;  %v411_v35 = vpop.f32.mrb[1].mxu1 }
 0x101   : > { %v371_v36 = vadd.f32 %v370_v34, %v265_v29  ;;  %v412_v37 = vadd.f32 %v411_v35, %v265_v29  ;;  %v372_v38 = vpop.f32.mrb[2].mxu0  ;;  %v413_v39 = vpop.f32.mrb[2].mxu1 }
 0x102   : > { %v416_v40 = vmul.f32 0.2, %v369_v32  ;;  %v418_v41 = vmul.f32 0.2, %v410_v33  ;;  %v373_v42 = vpop.f32.mrb[3].mxu0  ;;  %v414_v43 = vpop.f32.mrb[3].mxu1 }
 0x103   : > { %v417_v44 = vmul.f32 0.2, %v371_v36  ;;  %v419_v45 = vmul.f32 0.2, %v412_v37 }
 0x104   : > { %v420_v46 = vmax.f32 %v369_v32, %v416_v40  ;;  %v422_v47 = vmax.f32 %v410_v33, %v418_v41 }
 0x105   : > { %v421_v48 = vmax.f32 %v371_v36, %v417_v44  ;;  %v423_v50 = vmax.f32 %v412_v37, %v419_v45 }
 0x106   : > { %424 = vst [vmem:[%s243_s15] sm:$0xff] %v420_v46  ;;  %v435_v49 = vmul.f32 %v420_v46, %v420_v46  ;;  %426 = vst [vmem:[%s243_s15 + $0x10] sm:$0xff] %v422_v47  ;;  %v437_v54 = vmul.f32 %v422_v47, %v422_v47 }
 0x107   : > { %425 = vst [vmem:[%s243_s15 + $0x8] sm:$0xff] %v421_v48  ;;  %v428_v51 = vadd.f32 %v421_v48, %v420_v46  ;;  %v436_v52 = vmul.f32 %v421_v48, %v421_v48  ;;  %427 = vst [vmem:[%s243_s15 + $0x18] sm:$0xff] %v423_v50  ;;  %v438_v57 = vmul.f32 %v423_v50, %v423_v50 }
 0x109   : > { %v429_v53 = vadd.f32 %v428_v51, %v422_v47  ;;  %v439_v55 = vadd.f32 %v436_v52, %v435_v49 }
 0x10b   : > { %v430_v56 = vadd.f32 %v429_v53, %v423_v50  ;;  %v440_v58 = vadd.f32 %v439_v55, %v437_v54 }
 0x10d   : > { %431 = vadd.xlane.f32.xlu0 %v430_v56  ;;  %v441_v59 = vadd.f32 %v440_v58, %v438_v57 }
 0x10f   : > { %442 = vadd.xlane.f32.xlu1 %v441_v59 }
 0x19a   : > { %v432_v60 = vpop.xlane.xlu0 %431 }
 0x19b   : > { %434 = vst.msk [vmem:[%s248_s23] sm:$0xff] %vm433_vm2, %v432_v60 }
 0x19c   : > { %v443_v61 = vpop.xlane.xlu1 %442 }
 0x19d   : > { %445 = vst.msk [vmem:[%s248_s23] sm:$0xff] %vm444_vm3, %v443_v61 }
 0x19e PF: > { %p12_p10 = scmp.ge.s32.totalorder %s681_s19, 4   ;;  %s731_s15 = smov %s630_s16 }
 0x19f   : > { %s732_s16 = smov %s690_s22  ;;  %s733_s17 = smov %s681_s19 }
 0x1a0   :  { %14 = sbr.rel (!%p12_p10) target bundleno = 2 (0x2), region = 102 }

// kernel: vae_forward.11
= control target key start
LH: loop header
LB: loop body
LE: loop exit
PB: predicated region body
PF: predicated region fallthrough
CT: control target
= control target key end

     0   :  { %v216_v1 = vmov 0   ;;  %vm94_vm0 = vcmask 1043456   ;;  %vm90_vm1 = vcmask 588800   ;;  %vm162_vm2 = vcmask 7168   ;;  %s302_s0 = inlined_call_operand.vmem [shape: bf16[72,256], index: 0, kind: input, shape index: {}]   ;;  %s303_s2 = inlined_call_operand.vmem [shape: f32[16,1], index: 2, kind: input, shape index: {}]   ;;  %s304_s1 = inlined_call_operand.vmem [shape: bf16[16,72], index: 1, kind: input, shape index: {}]   ;;  %s305_s3 = inlined_call_operand.vmem [shape: f32[16,256], index: 3, kind: output, shape index: {0}]   ;;  %s306_s4 = inlined_call_operand.vmem [shape: f32[1,16,2], index: 4, kind: output, shape index: {1}]  }
   0x1   :  { %v201_v0 = vld [vmem:[%s302_s0 + $0x4] ss:$8 sps:$4 sm:$0xff]   ;;  %133 = vmatprep.mubr.bf16.mxu0 %v216_v1  ;;  %200 = vset.pattern.permute.xlu0 %v216_v1  ;;  %v203_v2 = vld [vmem:[%s302_s0] ss:$8 sps:$4 sm:$0xff]   ;;  %v204_v3 = vld [vmem:[%s302_s0 + $0x14] ss:$8 sps:$4 sm:$0xff]  }
   0x2   :  { %101 = vmatprep.subr.bf16.mxu0 %v201_v0  ;;  %v206_v4 = vld [vmem:[%s302_s0 + $0x10] ss:$8 sps:$4 sm:$0xff]   ;;  %v207_v5 = vld [vmem:[%s302_s0 + $0x24] ss:$8 sps:$4 sm:$0xff]   ;;  %v209_v7 = vld [vmem:[%s302_s0 + $0x20] ss:$8 sps:$4 sm:$0xff]  }
   0x3   :  { %102 = vmatpush1.bf16.msra.mxu0 %v203_v2  ;;  %v28_v6 = vld [vmem:[%s303_s2] sm:$0xff]  ;;  %v210_v8 = vld [vmem:[%s302_s0 + $0x34] ss:$8 sps:$4 sm:$0xff]   ;;  %v29_v9 = vld [vmem:[%s303_s2 + $0x8] sm:$0xff]  ;;  %vm175_vm3 = vcmask 15368  }
   0x4   :  { %103 = vmatprep.subr.bf16.mxu0 %v204_v3  ;;  %32 = vperm.xlu0 %200, %v28_v6   ;;  %v27_v10 = vld [vmem:[%s302_s0 + $0x40] sm:$0xff]  ;;  %v212_v11 = vld [vmem:[%s302_s0 + $0x30] ss:$8 sps:$4 sm:$0xff]  }
   0x5   :  { %v196_v12 = vcombine.high %v27_v10, %v27_v10  ;;  %v195_v13 = vcombine.low %v27_v10, %v27_v10  ;;  %v215_v15 = vld [vmem:[%s304_s1] sm:$0xff]  }
   0x7   :  { %104 = vmatpush1.bf16.msra.mxu0 %v206_v4  ;;  %v96_v14 = vsel %vm94_vm0, %v195_v13, 0 }
   0x8   :  { %105 = vmatprep.subr.bf16.mxu0 %v207_v5  ;;  %37 = vperm.xlu0 %200, %v29_v9  }
   0xb   :  { %106 = vmatpush1.bf16.msra.mxu0 %v209_v7 }
   0xc   :  { %107 = vmatprep.subr.bf16.mxu0 %v210_v8 }
   0xf   :  { %108 = vmatpush1.bf16.msra.mxu0 %v212_v11 }
  0x10   :  { %197 = vmatprep.subr.msk.bf16.mxu0 %vm94_vm0, %v196_v12 }
  0x13   :  { %110 = vmatpush1.bf16.msra.mxu0 %v96_v14 }
  0x16   :  { %198 = vmatmul.mubr.msk.bf16.vlgmr.msra.gmra.mrb[0].mxu0 %vm90_vm1, %v215_v15 }
  0x83   :  { %v33_v16 = vpop.permute.xlu0 %32 }
  0x87   :  { %v38_v18 = vpop.permute.xlu0 %37 }
  0xe9   :  { %v135_v17 = vpop.f32.mrb[0].mxu0 }
  0xea   :  { %v136_v19 = vadd.f32 %v135_v17, %v33_v16  ;;  %v137_v20 = vpop.f32.mrb[1].mxu0 }
  0xeb   :  { %v138_v21 = vadd.f32 %v137_v20, %v33_v16  ;;  %v139_v22 = vpop.f32.mrb[2].mxu0 }
  0xec   :  { %v144_v23 = vmul.f32 0.2, %v136_v19  ;;  %v140_v24 = vadd.f32 %v139_v22, %v38_v18  ;;  %v141_v25 = vpop.f32.mrb[3].mxu0 }
  0xed   :  { %v145_v26 = vmul.f32 0.2, %v138_v21  ;;  %v142_v27 = vadd.f32 %v141_v25, %v38_v18 }
  0xee   :  { %v148_v28 = vmax.f32 %v136_v19, %v144_v23  ;;  %v146_v29 = vmul.f32 0.2, %v140_v24 }
  0xef   :  { %v149_v30 = vmax.f32 %v138_v21, %v145_v26  ;;  %v147_v31 = vmul.f32 0.2, %v142_v27 }
  0xf0   :  { %152 = vst [vmem:[%s305_s3] sm:$0xff] %v148_v28  ;;  %v150_v32 = vmax.f32 %v140_v24, %v146_v29  ;;  %v165_v33 = vmul.f32 %v148_v28, %v148_v28 }
  0xf1   :  { %153 = vst [vmem:[%s305_s3 + $0x8] sm:$0xff] %v149_v30  ;;  %v151_v34 = vmax.f32 %v142_v27, %v147_v31  ;;  %v156_v35 = vadd.f32 %v149_v30, %v148_v28  ;;  %v166_v36 = vmul.f32 %v149_v30, %v149_v30 }
  0xf2   :  { %154 = vst [vmem:[%s305_s3 + $0x10] sm:$0xff] %v150_v32  ;;  %v167_v37 = vmul.f32 %v150_v32, %v150_v32 }
  0xf3   :  { %155 = vst [vmem:[%s305_s3 + $0x18] sm:$0xff] %v151_v34  ;;  %157 = vadd.xlane.f32.xlu1 %v156_v35  ;;  %v169_v38 = vadd.f32 %v166_v36, %v165_v33  ;;  %v159_v39 = vadd.f32 %v151_v34, %v150_v32  ;;  %v168_v40 = vmul.f32 %v151_v34, %v151_v34 }
  0xf5   :  { %170 = vadd.xlane.f32.xlu0 %v169_v38  ;;  %v172_v41 = vadd.f32 %v168_v40, %v167_v37 }
  0xf7   :  { %160 = vadd.xlane.f32.xlu1 %v159_v39 }
  0xfb   :  { %173 = vadd.xlane.f32.xlu1 %v172_v41 }
 0x180   :  { %v158_v42 = vpop.xlane.xlu1 %157 }
 0x181   :  { %163 = vst.msk [vmem:[%s306_s4] sm:$0xff] %vm162_vm2, %v158_v42 }
 0x182   :  { %v171_v43 = vpop.xlane.xlu0 %170 }
 0x183   :  { %176 = vst.msk [vmem:[%s306_s4] sm:$0xff] %vm175_vm3, %v171_v43 }
 0x184   :  { %v161_v44 = vpop.xlane.xlu1 %160 }
 0x185   :  { %164 = vst.msk [vmem:[%s306_s4 + $0x8] sm:$0xff] %vm162_vm2, %v161_v44 }
 0x188   :  { %v174_v45 = vpop.xlane.xlu1 %173 }
 0x189   :  { %177 = vst.msk [vmem:[%s306_s4 + $0x8] sm:$0xff] %vm175_vm3, %v174_v45 }

// kernel: vae_forward.12
= control target key start
LH: loop header
LB: loop body
LE: loop exit
PB: predicated region body
PF: predicated region fallthrough
CT: control target
= control target key end

     0   :  { %v70_v0 = vmov 1   ;;  %v71_v1 = vmov 0   ;;  %s111_s1 = inlined_call_operand.vmem [shape: f32[16,2], index: 1, kind: input, shape index: {}]   ;;  %s112_s0 = inlined_call_operand.vmem [shape: f32[16,256], index: 0, kind: input, shape index: {}]   ;;  %s113_s2 = inlined_call_operand.vmem [shape: bf16[16,256], index: 2, kind: output, shape index: {}]  }
   0x1   :  { %68 = vset.pattern.permute.xlu1 %v70_v0  ;;  %67 = vset.pattern.permute.xlu0 %v71_v1  ;;  %v15_v2 = vld [vmem:[%s111_s1] sm:$0xff]  ;;  %v16_v3 = vld [vmem:[%s111_s1 + $0x8] sm:$0xff]  ;;  %v13_v10 = vld [vmem:[%s112_s0 + $0x10] sm:$0xff] }
   0x2   :  { %32 = vperm.xlu1 %68, %v15_v2   ;;  %19 = vperm.xlu0 %67, %v15_v2   ;;  %v11_v4 = vld [vmem:[%s112_s0] sm:$0xff]  ;;  %v12_v5 = vld [vmem:[%s112_s0 + $0x8] sm:$0xff]  ;;  %v14_v11 = vld [vmem:[%s112_s0 + $0x18] sm:$0xff] }
   0x6   :  { %36 = vperm.xlu1 %68, %v16_v3   ;;  %24 = vperm.xlu0 %67, %v16_v3  }
   0xa   :  { %69 = vset.pattern.permute.xlu0 %v70_v0 }
  0x81   :  { %v33_v6 = vpop.permute.xlu1 %32  ;;  %v20_v7 = vpop.permute.xlu0 %19 }
  0x82   :  { %v27_v8 = vsub.f32 %v11_v4, %v20_v7  ;;  %v28_v9 = vsub.f32 %v12_v5, %v20_v7 }
  0x84   :  { %v39_v12 = vmul.f32 %v33_v6, %v27_v8  ;;  %v40_v13 = vmul.f32 %v33_v6, %v28_v9 }
  0x85   :  { %v25_v14 = vpop.permute.xlu0 %24  ;;  %v37_v18 = vpop.permute.xlu1 %36 }
  0x86   :  { %v63_v15 = vpack.c.bf16 %v40_v13, %v39_v12  ;;  %v29_v16 = vsub.f32 %v13_v10, %v25_v14  ;;  %v30_v17 = vsub.f32 %v14_v11, %v25_v14 }
  0x88   :  { %v41_v19 = vmul.f32 %v37_v18, %v29_v16  ;;  %v42_v20 = vmul.f32 %v37_v18, %v30_v17  ;;  %55 = vst [vmem:[%s113_s2] sm:$0xff] %v63_v15 }
  0x8a   :  { %v64_v21 = vpack.c.bf16 %v42_v20, %v41_v19 }
  0x8c   :  { %56 = vst [vmem:[%s113_s2 + $0x8] sm:$0xff] %v64_v21 }

// kernel: vae_forward.13
= control target key start
LH: loop header
LB: loop body
LE: loop exit
PB: predicated region body
PF: predicated region fallthrough
CT: control target
= control target key end

     0   :  { %s433_s27 = smov 32   ;;  %vm214_vm0 = vcmask 523264   ;;  %v434_v38 = vmov 0   ;;  %s435_s28 = smov 96   ;;  %vm282_vm1 = vcmask 261120   ;;  %v252_v49 = vlaneseq  ;;  %s566_s1 = inlined_call_operand.vmem [shape: bf16[256,64], index: 1, kind: input, shape index: {}]   ;;  %s567_s0 = inlined_call_operand.vmem [shape: bf16[16,256], index: 0, kind: input, shape index: {}]   ;;  %s568_s3 = inlined_call_operand.vmem [shape: f32[16,32], index: 3, kind: input, shape index: {}]   ;;  %s569_s2 = inlined_call_operand.vmem [shape: f32[1,64], index: 2, kind: input, shape index: {}]   ;;  %s570_s6 = inlined_call_operand.vmem [shape: f32[16,64], index: 6, kind: output, shape index: {0}]   ;;  %s571_s4 = inlined_call_operand.vmem [shape: bf16[32,256], index: 4, kind: input, shape index: {}]   ;;  %s572_s5 = inlined_call_operand.vmem [shape: f32[1,256], index: 5, kind: input, shape index: {}]   ;;  %s573_s7 = inlined_call_operand.vmem [shape: bf16[16,256], index: 7, kind: output, shape index: {1}]  }
   0x1   :  { %v404_v0 = vld [vmem:[%s566_s1 + $0x40] sm:$0xff]   ;;  %v406_v2 = vld [vmem:[%s566_s1 + $0x48] sm:$0xff]   ;;  %v408_v4 = vld [vmem:[%s566_s1 + $0x50] sm:$0xff]   ;;  %318 = vmatprep.mubr.bf16.mxu1 %v434_v38 }
   0x2   :  { %v405_v1 = vld [vmem:[%s566_s1] sm:$0xff]   ;;  %379 = vmatprep.subr.bf16.mxu0 %v404_v0  ;;  %v407_v3 = vld [vmem:[%s566_s1 + $0x8] sm:$0xff]   ;;  %v409_v5 = vld [vmem:[%s566_s1 + $0x10] sm:$0xff]   ;;  %v253_v50 = vshrl.u32 %v252_v49, 7 }
   0x3   :  { %380 = vmatpush3.bf16.msra.mxu0 %v405_v1  ;;  %v410_v6 = vld [vmem:[%s566_s1 + $0x58] sm:$0xff]   ;;  %v412_v8 = vld [vmem:[%s566_s1 + $0x60] sm:$0xff]   ;;  %v414_v10 = vld [vmem:[%s566_s1 + $0x68] sm:$0xff]  }
   0x4   :  { %381 = vmatprep.subr.bf16.mxu0 %v406_v2  ;;  %v411_v7 = vld [vmem:[%s566_s1 + $0x18] sm:$0xff]   ;;  %v413_v9 = vld [vmem:[%s566_s1 + $0x20] sm:$0xff]   ;;  %v415_v13 = vld [vmem:[%s566_s1 + $0x28] sm:$0xff]   ;;  %v254_v51 = vsub.s32 0, %v253_v50  ;;  %v258_v53 = vsub.s32 1, %v253_v50 }
   0x5   :  { %v422_v11 = vld [vmem:[%s567_s0 + $0x4] ss:$8 sps:$4 sm:$0xff]   ;;  %v416_v15 = vld [vmem:[%s566_s1 + $0x70] sm:$0xff]   ;;  %v418_v17 = vld [vmem:[%s566_s1 + $0x78] sm:$0xff]  }
   0x6   :  { %v223_v12 = vld [vmem:[%s568_s3] sm:$0xff]  ;;  %205 = vmatprep.mubr.bf16.mxu0 %v422_v11  ;;  %v224_v14 = vld [vmem:[%s568_s3 + $0x8] sm:$0xff]  ;;  %v417_v16 = vld [vmem:[%s566_s1 + $0x30] sm:$0xff]  }
   0x7   :  { %382 = vmatpush3.bf16.msra.mxu0 %v407_v3  ;;  %227 = vrot.lane.b32.xlu0 %v223_v12, %s433_s27  ;;  %v419_v18 = vld [vmem:[%s566_s1 + $0x38] sm:$0xff]   ;;  %v420_v19 = vld [vmem:[%s567_s0] ss:$8 sps:$4 sm:$0xff]   ;;  %v423_v32 = vld [vmem:[%s571_s4 + $0x4] ss:$8 sps:$4 sm:$0xff]  }
   0x8   :  { %383 = vmatprep.subr.bf16.mxu0 %v408_v4  ;;  %v351_v21 = vld [vmem:[%s569_s2] ss:$0 sm:$0xff]  ;;  %286 = vmatprep.subr.bf16.mxu1 %v423_v32  ;;  %v426_v35 = vld [vmem:[%s571_s4 + $0x14] ss:$8 sps:$4 sm:$0xff]   ;;  %v428_v36 = vld [vmem:[%s571_s4 + $0x10] ss:$8 sps:$4 sm:$0xff]  }
   0x9   :  { %v425_v33 = vld [vmem:[%s571_s4] ss:$8 sps:$4 sm:$0xff]  }
   0xa   :  { %287 = vmatpush1.bf16.msra.mxu1 %v425_v33  ;;  %v250_v52 = vld [vmem:[%s572_s5] sm:$0x3] }
   0xb   :  { %384 = vmatpush3.bf16.msra.mxu0 %v409_v5  ;;  %229 = vrot.lane.b32.xlu0 %v224_v14, %s433_s27  ;;  %v255_v54 = vrot.slane %v250_v52, %v254_v51  ;;  %v259_v55 = vrot.slane %v250_v52, %v258_v53 }
   0xc   :  { %385 = vmatprep.subr.bf16.mxu0 %v410_v6  ;;  %288 = vmatprep.subr.bf16.mxu1 %v426_v35 }
   0xe   :  { %289 = vmatpush1.bf16.msra.mxu1 %v428_v36 }
   0xf   :  { %386 = vmatpush3.bf16.msra.mxu0 %v411_v7 }
  0x10   :  { %387 = vmatprep.subr.bf16.mxu0 %v412_v8 }
  0x13   :  { %388 = vmatpush3.bf16.msra.mxu0 %v413_v9 }
  0x14   :  { %389 = vmatprep.subr.bf16.mxu0 %v414_v10 }
  0x17   :  { %390 = vmatpush3.bf16.msra.mxu0 %v415_v13 }
  0x18   :  { %391 = vmatprep.subr.bf16.mxu0 %v416_v15 }
  0x1b   :  { %392 = vmatpush3.bf16.msra.mxu0 %v417_v16 }
  0x1c   :  { %393 = vmatprep.subr.bf16.mxu0 %v418_v17 }
  0x1f   :  { %394 = vmatpush3.bf16.msra.mxu0 %v419_v18 }
  0x22   :  { %206 = vmatmul.mubr.bf16.vlgmr.msra.gmra.mrb[0].mxu0 %v420_v19 }
  0x79   :  { %v228_v37 = vpop.permute.xlu0 %227 }
  0x7d   :  { %v230_v42 = vpop.permute.xlu0 %229 }
  0xf5   :  { %v395_v20 = vpop.f32.mrb[0].mxu0 }
  0xf6   :  { %v396_v22 = vpop.f32.mrb[1].mxu0 }
  0xf7   :  { %v397_v23 = vadd.f32 %v396_v22, %v395_v20  ;;  %v398_v24 = vpop.f32.mrb[2].mxu0 }
  0xf8   :  { %v399_v25 = vpop.f32.mrb[3].mxu0 }
  0xf9   :  { %v208_v26 = vadd.f32 %v397_v23, %v351_v21  ;;  %v400_v27 = vadd.f32 %v399_v25, %v398_v24 }
  0xfb   :  { %215 = vst.msk [vmem:[%s570_s6] sm:$0xff] %vm214_vm0, %v208_v26  ;;  %v217_v28 = vmul.f32 0.5, %v208_v26  ;;  %v211_v29 = vadd.f32 %v400_v27, %v351_v21 }
  0xfd   :  { %v219_v30 = vmul.f32 1.442695, %v217_v28  ;;  %216 = vst.msk [vmem:[%s570_s6 + $0x8] sm:$0xff] %vm214_vm0, %v211_v29  ;;  %v218_v31 = vmul.f32 0.5, %v211_v29 }
  0xff   :  { %429 = vpow2.f32 %v219_v30  ;;  %v221_v34 = vmul.f32 1.442695, %v218_v31 }
 0x101   :  { %431 = vpow2.f32 %v221_v34 }
 0x109   :  { %v430_v39 = vpop.eup %429 }
 0x10a   :  { %v233_v40 = vmul.f32 %v430_v39, %v228_v37 }
 0x10b   :  { %v432_v41 = vpop.eup %431 }
 0x10c   :  { %237 = vrot.lane.b32.xlu1 %v233_v40, %s435_s28  ;;  %v234_v43 = vmul.f32 %v432_v41, %v230_v42 }
 0x110   :  { %239 = vrot.lane.b32.xlu1 %v234_v43, %s435_s28 }
 0x17e   :  { %v238_v44 = vpop.permute.xlu1 %237 }
 0x17f   :  { %v243_v46 = vadd.f32 %v238_v44, %v208_v26 }
 0x182   :  { %v240_v45 = vpop.permute.xlu1 %239 }
 0x183   :  { %v244_v47 = vadd.f32 %v240_v45, %v211_v29 }
 0x185   :  { %v245_v48 = vpack.c.bf16 %v244_v47, %v243_v46 }
 0x187   :  { %374 = vmatmul.mubr.msk.bf16.vlgmr.msra.gmra.mrb[0].mxu1 %vm282_vm1, %v245_v48 }
 0x25a   :  { %v320_v56 = vpop.f32.mrb[0].mxu1 }
 0x25b   :  { %v321_v57 = vadd.f32 %v320_v56, %v255_v54  ;;  %v322_v58 = vpop.f32.mrb[1].mxu1 }
 0x25c   :  { %v323_v59 = vadd.f32 %v322_v58, %v259_v55  ;;  %v324_v60 = vpop.f32.mrb[2].mxu1 }
 0x25d   :  { %v325_v61 = vadd.f32 %v324_v60, %v255_v54  ;;  %v326_v62 = vpop.f32.mrb[3].mxu1 }
 0x25e   :  { %v377_v63 = vpack.c.bf16 %v323_v59, %v321_v57  ;;  %v327_v0 = vadd.f32 %v326_v62, %v259_v55 }
 0x260   :  { %341 = vst [vmem:[%s573_s7] sm:$0xff] %v377_v63  ;;  %v378_v1 = vpack.c.bf16 %v327_v0, %v325_v61 }
 0x262   :  { %342 = vst [vmem:[%s573_s7 + $0x8] sm:$0xff] %v378_v1 }

// kernel: vae_forward.14
= control target key start
LH: loop header
LB: loop body
LE: loop exit
PB: predicated region body
PF: predicated region fallthrough
CT: control target
= control target key end

     0   :  { %v383_v1 = vmov 0   ;;  %vm171_vm0 = vcmask 130048   ;;  %vm267_vm1 = vcmask 7168   ;;  %vm292_vm2 = vcmask 15368   ;;  %s535_s0 = inlined_call_operand.vmem [shape: bf16[144,256], index: 0, kind: input, shape index: {}]   ;;  %s536_s1 = inlined_call_operand.vmem [shape: bf16[32,144], index: 1, kind: input, shape index: {}]   ;;  %s537_s2 = inlined_call_operand.vmem [shape: f32[32,1], index: 2, kind: input, shape index: {}]   ;;  %s538_s3 = inlined_call_operand.vmem [shape: f32[32,256], index: 3, kind: output, shape index: {0}]   ;;  %s539_s4 = inlined_call_operand.vmem [shape: f32[1,32,2], index: 4, kind: output, shape index: {1}]  }
   0x1   :  { %v350_v0 = vld [vmem:[%s535_s0 + $0x4] ss:$8 sps:$4 sm:$0xff]   ;;  %348 = vset.pattern.permute.xlu0 %v383_v1  ;;  %349 = vset.pattern.permute.xlu1 %v383_v1  ;;  %v352_v2 = vld [vmem:[%s535_s0] ss:$8 sps:$4 sm:$0xff]   ;;  %v353_v3 = vld [vmem:[%s535_s0 + $0x14] ss:$8 sps:$4 sm:$0xff]  }
   0x2   :  { %178 = vmatprep.subr.bf16.mxu0 %v350_v0  ;;  %329 = vmatprep.subr.bf16.mxu1 %v350_v0  ;;  %v355_v4 = vld [vmem:[%s535_s0 + $0x10] ss:$8 sps:$4 sm:$0xff]   ;;  %v356_v5 = vld [vmem:[%s535_s0 + $0x24] ss:$8 sps:$4 sm:$0xff]   ;;  %v358_v6 = vld [vmem:[%s535_s0 + $0x20] ss:$8 sps:$4 sm:$0xff]  }
   0x3   :  { %179 = vmatpush1.bf16.msra.mxu0 %v352_v2  ;;  %338 = vmatpush1.bf16.msra.mxu1 %v352_v2  ;;  %v359_v7 = vld [vmem:[%s535_s0 + $0x34] ss:$8 sps:$4 sm:$0xff]   ;;  %v361_v8 = vld [vmem:[%s535_s0 + $0x30] ss:$8 sps:$4 sm:$0xff]   ;;  %v362_v9 = vld [vmem:[%s535_s0 + $0x44] ss:$8 sps:$4 sm:$0xff]  }
   0x4   :  { %180 = vmatprep.subr.bf16.mxu0 %v353_v3  ;;  %330 = vmatprep.subr.bf16.mxu1 %v353_v3  ;;  %v379_v10 = vld [vmem:[%s536_s1 + $0x4] ss:$8 sps:$4 sm:$0xff]   ;;  %v382_v11 = vld [vmem:[%s536_s1 + $0x14] ss:$8 sps:$4 sm:$0xff]   ;;  %v364_v12 = vld [vmem:[%s535_s0 + $0x40] ss:$8 sps:$4 sm:$0xff]  }
   0x5   :  { %v39_v13 = vld [vmem:[%s537_s2] sm:$0xff]  ;;  %v41_v14 = vld [vmem:[%s537_s2 + $0x10] sm:$0xff]  ;;  %327 = vmatprep.mubr.msk.bf16.mxu0 %vm171_vm0, %v379_v10  ;;  %328 = vmatprep.mubr.msk.bf16.mxu1 %vm171_vm0, %v382_v11  ;;  %v40_v17 = vld [vmem:[%s537_s2 + $0x8] sm:$0xff] }
   0x6   :  { %v365_v15 = vld [vmem:[%s535_s0 + $0x54] ss:$8 sps:$4 sm:$0xff]   ;;  %45 = vperm.xlu0 %348, %v39_v13   ;;  %55 = vperm.xlu1 %349, %v41_v14   ;;  %v367_v16 = vld [vmem:[%s535_s0 + $0x50] ss:$8 sps:$4 sm:$0xff]   ;;  %v368_v19 = vld [vmem:[%s535_s0 + $0x64] ss:$8 sps:$4 sm:$0xff]  }
   0x7   :  { %181 = vmatpush1.bf16.msra.mxu0 %v355_v4  ;;  %339 = vmatpush1.bf16.msra.mxu1 %v355_v4  ;;  %v42_v18 = vld [vmem:[%s537_s2 + $0x18] sm:$0xff]  ;;  %v370_v20 = vld [vmem:[%s535_s0 + $0x60] ss:$8 sps:$4 sm:$0xff]   ;;  %v374_v23 = vld [vmem:[%s535_s0 + $0x84] ss:$8 sps:$4 sm:$0xff]  }
   0x8   :  { %182 = vmatprep.subr.bf16.mxu0 %v356_v5  ;;  %331 = vmatprep.subr.bf16.mxu1 %v356_v5  ;;  %v371_v21 = vld [vmem:[%s535_s0 + $0x74] ss:$8 sps:$4 sm:$0xff]   ;;  %v373_v22 = vld [vmem:[%s535_s0 + $0x70] ss:$8 sps:$4 sm:$0xff]   ;;  %v376_v24 = vld [vmem:[%s535_s0 + $0x80] ss:$8 sps:$4 sm:$0xff]  }
   0x9   :  { %v377_v25 = vld [vmem:[%s536_s1] ss:$8 sps:$4 sm:$0xff]   ;;  %v380_v26 = vld [vmem:[%s536_s1 + $0x10] ss:$8 sps:$4 sm:$0xff]  }
   0xa   :  { %50 = vperm.xlu0 %348, %v40_v17   ;;  %60 = vperm.xlu1 %349, %v42_v18  }
   0xb   :  { %183 = vmatpush1.bf16.msra.mxu0 %v358_v6  ;;  %340 = vmatpush1.bf16.msra.mxu1 %v358_v6 }
   0xc   :  { %184 = vmatprep.subr.bf16.mxu0 %v359_v7  ;;  %332 = vmatprep.subr.bf16.mxu1 %v359_v7 }
   0xf   :  { %185 = vmatpush1.bf16.msra.mxu0 %v361_v8  ;;  %341 = vmatpush1.bf16.msra.mxu1 %v361_v8 }
  0x10   :  { %186 = vmatprep.subr.bf16.mxu0 %v362_v9  ;;  %333 = vmatprep.subr.bf16.mxu1 %v362_v9 }
  0x13   :  { %187 = vmatpush1.bf16.msra.mxu0 %v364_v12  ;;  %342 = vmatpush1.bf16.msra.mxu1 %v364_v12 }
  0x14   :  { %188 = vmatprep.subr.bf16.mxu0 %v365_v15  ;;  %334 = vmatprep.subr.bf16.mxu1 %v365_v15 }
  0x17   :  { %189 = vmatpush1.bf16.msra.mxu0 %v367_v16  ;;  %343 = vmatpush1.bf16.msra.mxu1 %v367_v16 }
  0x18   :  { %190 = vmatprep.subr.bf16.mxu0 %v368_v19  ;;  %335 = vmatprep.subr.bf16.mxu1 %v368_v19 }
  0x1b   :  { %191 = vmatpush1.bf16.msra.mxu0 %v370_v20  ;;  %344 = vmatpush1.bf16.msra.mxu1 %v370_v20 }
  0x1c   :  { %192 = vmatprep.subr.bf16.mxu0 %v371_v21  ;;  %336 = vmatprep.subr.bf16.mxu1 %v371_v21 }
  0x1f   :  { %193 = vmatpush1.bf16.msra.mxu0 %v373_v22  ;;  %345 = vmatpush1.bf16.msra.mxu1 %v373_v22 }
  0x20   :  { %194 = vmatprep.subr.bf16.mxu0 %v374_v23  ;;  %337 = vmatprep.subr.bf16.mxu1 %v374_v23 }
  0x23   :  { %195 = vmatpush1.bf16.msra.mxu0 %v376_v24  ;;  %346 = vmatpush1.bf16.msra.mxu1 %v376_v24 }
  0x26   :  { %211 = vmatmul.mubr.bf16.vlgmr.msra.gmra.mrb[0].mxu0 %v377_v25  ;;  %221 = vmatmul.mubr.bf16.vlgmr.msra.gmra.mrb[0].mxu1 %v380_v26 }
  0x85   :  { %v46_v27 = vpop.permute.xlu0 %45  ;;  %v56_v28 = vpop.permute.xlu1 %55 }
  0x89   :  { %v51_v29 = vpop.permute.xlu0 %50  ;;  %v61_v30 = vpop.permute.xlu1 %60 }
  0xf9   :  { %v212_v31 = vpop.f32.mrb[0].mxu0  ;;  %v222_v32 = vpop.f32.mrb[0].mxu1 }
  0xfa   :  { %v213_v33 = vadd.f32 %v212_v31, %v46_v27  ;;  %v223_v34 = vadd.f32 %v222_v32, %v56_v28  ;;  %v214_v35 = vpop.f32.mrb[1].mxu0  ;;  %v224_v36 = vpop.f32.mrb[1].mxu1 }
  0xfb   :  { %v215_v37 = vadd.f32 %v214_v35, %v46_v27  ;;  %v225_v38 = vadd.f32 %v224_v36, %v56_v28  ;;  %v216_v39 = vpop.f32.mrb[2].mxu0  ;;  %v226_v40 = vpop.f32.mrb[2].mxu1 }
  0xfc   :  { %v231_v41 = vmul.f32 0.2, %v213_v33  ;;  %v235_v42 = vmul.f32 0.2, %v223_v34  ;;  %v217_v43 = vadd.f32 %v216_v39, %v51_v29  ;;  %v227_v44 = vadd.f32 %v226_v40, %v61_v30  ;;  %v218_v45 = vpop.f32.mrb[3].mxu0  ;;  %v228_v46 = vpop.f32.mrb[3].mxu1 }
  0xfd   :  { %v232_v47 = vmul.f32 0.2, %v215_v37  ;;  %v236_v48 = vmul.f32 0.2, %v225_v38  ;;  %v219_v49 = vadd.f32 %v218_v45, %v51_v29  ;;  %v229_v50 = vadd.f32 %v228_v46, %v61_v30 }
  0xfe   :  { %v239_v51 = vmax.f32 %v213_v33, %v231_v41  ;;  %v243_v52 = vmax.f32 %v223_v34, %v235_v42  ;;  %v233_v53 = vmul.f32 0.2, %v217_v43  ;;  %v237_v54 = vmul.f32 0.2, %v227_v44 }
  0xff   :  { %v240_v55 = vmax.f32 %v215_v37, %v232_v47  ;;  %v244_v56 = vmax.f32 %v225_v38, %v236_v48  ;;  %v234_v57 = vmul.f32 0.2, %v219_v49  ;;  %v238_v58 = vmul.f32 0.2, %v229_v50 }
 0x100   :  { %247 = vst [vmem:[%s538_s3] sm:$0xff] %v239_v51  ;;  %251 = vst [vmem:[%s538_s3 + $0x20] sm:$0xff] %v243_v52  ;;  %v241_v59 = vmax.f32 %v217_v43, %v233_v53  ;;  %v245_v60 = vmax.f32 %v227_v44, %v237_v54  ;;  %v272_v61 = vmul.f32 %v239_v51, %v239_v51 }
 0x101   :  { %v276_v62 = vmul.f32 %v243_v52, %v243_v52  ;;  %248 = vst [vmem:[%s538_s3 + $0x8] sm:$0xff] %v240_v55  ;;  %252 = vst [vmem:[%s538_s3 + $0x28] sm:$0xff] %v244_v56  ;;  %v242_v63 = vmax.f32 %v219_v49, %v234_v57  ;;  %v246_v0 = vmax.f32 %v229_v50, %v238_v58 }
 0x102   :  { %v255_v1 = vadd.f32 %v240_v55, %v239_v51  ;;  %v261_v2 = vadd.f32 %v244_v56, %v243_v52  ;;  %249 = vst [vmem:[%s538_s3 + $0x10] sm:$0xff] %v241_v59  ;;  %253 = vst [vmem:[%s538_s3 + $0x30] sm:$0xff] %v245_v60  ;;  %v273_v3 = vmul.f32 %v240_v55, %v240_v55 }
 0x103   :  { %v277_v4 = vmul.f32 %v244_v56, %v244_v56  ;;  %v274_v5 = vmul.f32 %v241_v59, %v241_v59  ;;  %v278_v6 = vmul.f32 %v245_v60, %v245_v60  ;;  %250 = vst [vmem:[%s538_s3 + $0x18] sm:$0xff] %v242_v63  ;;  %254 = vst [vmem:[%s538_s3 + $0x38] sm:$0xff] %v246_v0 }
 0x104   :  { %256 = vadd.xlane.f32.xlu0 %v255_v1  ;;  %v258_v7 = vadd.f32 %v242_v63, %v241_v59  ;;  %v264_v8 = vadd.f32 %v246_v0, %v245_v60  ;;  %v275_v9 = vmul.f32 %v242_v63, %v242_v63  ;;  %v279_v10 = vmul.f32 %v246_v0, %v246_v0 }
 0x105   :  { %v280_v11 = vadd.f32 %v273_v3, %v272_v61  ;;  %v286_v12 = vadd.f32 %v277_v4, %v276_v62 }
 0x106   :  { %259 = vadd.xlane.f32.xlu1 %v258_v7  ;;  %v283_v13 = vadd.f32 %v275_v9, %v274_v5  ;;  %v289_v14 = vadd.f32 %v279_v10, %v278_v6 }
 0x108   :  { %262 = vadd.xlane.f32.xlu0 %v261_v2 }
 0x10a   :  { %281 = vadd.xlane.f32.xlu1 %v280_v11 }
 0x10c   :  { %265 = vadd.xlane.f32.xlu0 %v264_v8 }
 0x10e   :  { %287 = vadd.xlane.f32.xlu1 %v286_v12 }
 0x110   :  { %284 = vadd.xlane.f32.xlu0 %v283_v13 }
 0x114   :  { %290 = vadd.xlane.f32.xlu0 %v289_v14 }
 0x191   :  { %v257_v15 = vpop.xlane.xlu0 %256 }
 0x192   :  { %268 = vst.msk [vmem:[%s539_s4] sm:$0xff] %vm267_vm1, %v257_v15 }
 0x193   :  { %v260_v16 = vpop.xlane.xlu1 %259 }
 0x194   :  { %269 = vst.msk [vmem:[%s539_s4 + $0x8] sm:$0xff] %vm267_vm1, %v260_v16 }
 0x195   :  { %v263_v17 = vpop.xlane.xlu0 %262 }
 0x196   :  { %270 = vst.msk [vmem:[%s539_s4 + $0x10] sm:$0xff] %vm267_vm1, %v263_v17 }
 0x197   :  { %v282_v18 = vpop.xlane.xlu1 %281 }
 0x198   :  { %293 = vst.msk [vmem:[%s539_s4] sm:$0xff] %vm292_vm2, %v282_v18 }
 0x199   :  { %v266_v19 = vpop.xlane.xlu0 %265 }
 0x19a   :  { %271 = vst.msk [vmem:[%s539_s4 + $0x18] sm:$0xff] %vm267_vm1, %v266_v19 }
 0x19b   :  { %v288_v20 = vpop.xlane.xlu1 %287 }
 0x19c   :  { %295 = vst.msk [vmem:[%s539_s4 + $0x10] sm:$0xff] %vm292_vm2, %v288_v20 }
 0x19d   :  { %v285_v21 = vpop.xlane.xlu0 %284 }
 0x19e   :  { %294 = vst.msk [vmem:[%s539_s4 + $0x8] sm:$0xff] %vm292_vm2, %v285_v21 }
 0x1a1   :  { %v291_v22 = vpop.xlane.xlu0 %290 }
 0x1a2   :  { %296 = vst.msk [vmem:[%s539_s4 + $0x18] sm:$0xff] %vm292_vm2, %v291_v22 }

// kernel: vae_forward.15
= control target key start
LH: loop header
LB: loop body
LE: loop exit
PB: predicated region body
PF: predicated region fallthrough
CT: control target
= control target key end

     0   :  { %v121_v0 = vmov 0   ;;  %v122_v5 = vmov 1   ;;  %s186_s1 = inlined_call_operand.vmem [shape: f32[32,2], index: 1, kind: input, shape index: {}]   ;;  %s187_s0 = inlined_call_operand.vmem [shape: f32[32,256], index: 0, kind: input, shape index: {}]   ;;  %s188_s2 = inlined_call_operand.vmem [shape: bf16[32,256], index: 2, kind: output, shape index: {}]  }
   0x1   :  { %118 = vset.pattern.permute.xlu1 %v121_v0  ;;  %117 = vset.pattern.permute.xlu0 %v121_v0  ;;  %v21_v1 = vld [vmem:[%s186_s1 + $0x10] sm:$0xff]  ;;  %v19_v2 = vld [vmem:[%s186_s1] sm:$0xff]  ;;  %v22_v3 = vld [vmem:[%s186_s1 + $0x18] sm:$0xff] }
   0x2   :  { %35 = vperm.xlu1 %118, %v21_v1   ;;  %25 = vperm.xlu0 %117, %v19_v2   ;;  %v20_v4 = vld [vmem:[%s186_s1 + $0x8] sm:$0xff]  ;;  %v11_v8 = vld [vmem:[%s187_s0] sm:$0xff]  ;;  %v13_v12 = vld [vmem:[%s187_s0 + $0x10] sm:$0xff] }
   0x3   :  { %v12_v11 = vld [vmem:[%s187_s0 + $0x8] sm:$0xff]  ;;  %v14_v13 = vld [vmem:[%s187_s0 + $0x18] sm:$0xff]  ;;  %v15_v14 = vld [vmem:[%s187_s0 + $0x20] sm:$0xff] }
   0x4   :  { %v16_v15 = vld [vmem:[%s187_s0 + $0x28] sm:$0xff]  ;;  %v17_v20 = vld [vmem:[%s187_s0 + $0x30] sm:$0xff]  ;;  %v18_v21 = vld [vmem:[%s187_s0 + $0x38] sm:$0xff] }
   0x6   :  { %40 = vperm.xlu1 %118, %v22_v3   ;;  %30 = vperm.xlu0 %117, %v20_v4  }
   0xa   :  { %120 = vset.pattern.permute.xlu1 %v122_v5  ;;  %119 = vset.pattern.permute.xlu0 %v122_v5 }
   0xb   :  { %56 = vperm.xlu1 %120, %v20_v4   ;;  %52 = vperm.xlu0 %119, %v19_v2  }
   0xf   :  { %60 = vperm.xlu1 %120, %v21_v1   ;;  %64 = vperm.xlu0 %119, %v22_v3  }
  0x81   :  { %v36_v6 = vpop.permute.xlu1 %35  ;;  %v26_v7 = vpop.permute.xlu0 %25 }
  0x82   :  { %v43_v16 = vsub.f32 %v11_v8, %v26_v7  ;;  %v44_v17 = vsub.f32 %v12_v11, %v26_v7  ;;  %v47_v28 = vsub.f32 %v15_v14, %v36_v6  ;;  %v48_v29 = vsub.f32 %v16_v15, %v36_v6 }
  0x85   :  { %v41_v9 = vpop.permute.xlu1 %40  ;;  %v31_v10 = vpop.permute.xlu0 %30 }
  0x86   :  { %v45_v18 = vsub.f32 %v13_v12, %v31_v10  ;;  %v46_v19 = vsub.f32 %v14_v13, %v31_v10  ;;  %v49_v30 = vsub.f32 %v17_v20, %v41_v9  ;;  %v50_v31 = vsub.f32 %v18_v21, %v41_v9 }
  0x8a   :  { %v57_v22 = vpop.permute.xlu1 %56  ;;  %v53_v23 = vpop.permute.xlu0 %52 }
  0x8b   :  { %v69_v24 = vmul.f32 %v57_v22, %v45_v18  ;;  %v70_v25 = vmul.f32 %v57_v22, %v46_v19  ;;  %v67_v26 = vmul.f32 %v53_v23, %v43_v16  ;;  %v68_v27 = vmul.f32 %v53_v23, %v44_v17 }
  0x8d   :  { %v112_v32 = vpack.c.bf16 %v70_v25, %v69_v24  ;;  %v111_v33 = vpack.c.bf16 %v68_v27, %v67_v26 }
  0x8e   :  { %v61_v34 = vpop.permute.xlu1 %60  ;;  %v65_v35 = vpop.permute.xlu0 %64 }
  0x8f   :  { %100 = vst [vmem:[%s188_s2 + $0x8] sm:$0xff] %v112_v32  ;;  %99 = vst [vmem:[%s188_s2] sm:$0xff] %v111_v33  ;;  %v71_v36 = vmul.f32 %v61_v34, %v47_v28  ;;  %v72_v37 = vmul.f32 %v61_v34, %v48_v29  ;;  %v73_v38 = vmul.f32 %v65_v35, %v49_v30 }
  0x90   :  { %v74_v39 = vmul.f32 %v65_v35, %v50_v31 }
  0x91   :  { %v113_v40 = vpack.c.bf16 %v72_v37, %v71_v36 }
  0x92   :  { %v114_v41 = vpack.c.bf16 %v74_v39, %v73_v38 }
  0x93   :  { %101 = vst [vmem:[%s188_s2 + $0x10] sm:$0xff] %v113_v40 }
  0x94   :  { %102 = vst [vmem:[%s188_s2 + $0x18] sm:$0xff] %v114_v41 }

// kernel: vae_forward.16
= control target key start
LH: loop header
LB: loop body
LE: loop exit
PB: predicated region body
PF: predicated region fallthrough
CT: control target
= control target key end

     0   :  { %s830_s15 = smov 0   ;;  %s832_s16 = smov 0   ;;  %s966_s0 = inlined_call_operand.vmem [shape: bf16[72,1024], index: 0, kind: input, shape index: {}]   ;;  %s967_s1 = inlined_call_operand.vmem [shape: bf16[16,72], index: 1, kind: input, shape index: {}]   ;;  %s968_s2 = inlined_call_operand.vmem [shape: f32[16,1], index: 2, kind: input, shape index: {}]   ;;  %s969_s3 = inlined_call_operand.vmem [shape: f32[16,1024], index: 3, kind: output, shape index: {0}]   ;;  %s970_s4 = inlined_call_operand.vmem [shape: f32[2,16,2], index: 4, kind: output, shape index: {1}]  }
   0x1   :  { %s834_s17 = smov 0  }
   0x2 LB: > { %s846_s18 = sadd.s32 4294967295, %s802_s17   ;;  %s849_s19 = sadd.s32 1, %s802_s17   ;;  %s802_s17 = sphi %s834_s17, %s974_s17   ;;  %s798_s16 = sphi %s832_s16, %s973_s16   ;;  %s794_s15 = sphi %s830_s15, %s972_s15  }
   0x3   : > { %s19_s20 = ssub.s32 %s802_s17, %s849_s19  ;;  %s22_s21 = sadd.s32 1, %s798_s16 }
   0x4   : > { %p20_p0 = scmp.eq.s32.totalorder %s19_s20, 0  ;;  %p29_p1 = scmp.ne.s32.totalorder %s798_s16, %s794_s15 }
   0x5   : > { %p30_p2 = scmp.eq.s32.totalorder %s802_s17, 0  ;;  %p101_p3 = scmp.eq.s32.totalorder %s846_s18, 1 }
   0x6   : > { %s859_s22 = scalar_select %p20_p0, %s798_s16, %s22_s21  }
   0x7   : > { %p31_p4 = por %p30_p2, %p29_p1  ;;  %p861_p5 = por %p101_p3, %p29_p1 }
   0x8   : > { %p683_p6 = scmp.ge.s32.totalorder %s802_s17, 2 }
   0xa   : > { %155 = sbr.rel (%p683_p6) target bundleno = 30 (0x1e), region = 24 }
  0x11   : > { %158 = sbr.rel (!%p31_p4) target bundleno = 30 (0x1e), region = 28  ;;  %s160_s24 = sand.u32 (%p31_p4), 1, %s798_s16  }
  0x12   : > { %s720_s25 = sshll.u32 (%p31_p4), %s802_s17, 4  ;;  %s723_s26 = smul.u32 (%p31_p4), 144, %s160_s24 }
  0x13   : > { %s871_s29 = scalar_lea.vmem (%p31_p4), %s966_s0, %s720_s25 }
  0x14   : > { %v178_v0 = vld [vmem:[%s871_s29] sm:$0xff] (%p31_p4)  ;;  %v180_v1 = vld [vmem:[%s871_s29 + $0x8] sm:$0xff] (%p31_p4)  ;;  %s162_s30 = scalar_lea.vmem (%p31_p4), [#allocation2], %s723_s26 }
  0x15   : > { %v182_v2 = vld [vmem:[%s871_s29 + $0x20] sm:$0xff] (%p31_p4)  ;;  %v184_v3 = vld [vmem:[%s871_s29 + $0x28] sm:$0xff] (%p31_p4)  ;;  %179 = vst [vmem:[%s162_s30] sm:$0xff] (%p31_p4), %v178_v0  ;;  %181 = vst [vmem:[%s162_s30 + $0x8] sm:$0xff] (%p31_p4), %v180_v1 }
  0x16   : > { %v186_v4 = vld [vmem:[%s871_s29 + $0x40] sm:$0xff] (%p31_p4)  ;;  %v188_v5 = vld [vmem:[%s871_s29 + $0x48] sm:$0xff] (%p31_p4)  ;;  %183 = vst [vmem:[%s162_s30 + $0x10] sm:$0xff] (%p31_p4), %v182_v2  ;;  %185 = vst [vmem:[%s162_s30 + $0x18] sm:$0xff] (%p31_p4), %v184_v3 }
  0x17   : > { %187 = vst [vmem:[%s162_s30 + $0x20] sm:$0xff] (%p31_p4), %v186_v4  ;;  %189 = vst [vmem:[%s162_s30 + $0x28] sm:$0xff] (%p31_p4), %v188_v5  ;;  %v190_v6 = vld [vmem:[%s871_s29 + $0x60] sm:$0xff] (%p31_p4)  ;;  %v192_v7 = vld [vmem:[%s871_s29 + $0x68] sm:$0xff] (%p31_p4) }
  0x18   : > { %v194_v8 = vld [vmem:[%s871_s29 + $0x80] sm:$0xff]  ;;  %191 = vst [vmem:[%s162_s30 + $0x30] sm:$0xff] %v190_v6  ;;  %193 = vst [vmem:[%s162_s30 + $0x38] sm:$0xff] %v192_v7  ;;  %v196_v9 = vld [vmem:[%s871_s29 + $0x88] sm:$0xff] }
  0x19   : > { %195 = vst [vmem:[%s162_s30 + $0x40] sm:$0xff] %v194_v8  ;;  %v198_v10 = vld [vmem:[%s871_s29 + $0xa0] sm:$0xff]  ;;  %v200_v11 = vld [vmem:[%s871_s29 + $0xa8] sm:$0xff]  ;;  %197 = vst [vmem:[%s162_s30 + $0x48] sm:$0xff] %v196_v9 }
  0x1a   : > { %199 = vst [vmem:[%s162_s30 + $0x50] sm:$0xff] %v198_v10  ;;  %201 = vst [vmem:[%s162_s30 + $0x58] sm:$0xff] %v200_v11  ;;  %v202_v12 = vld [vmem:[%s871_s29 + $0xc0] sm:$0xff]  ;;  %v204_v13 = vld [vmem:[%s871_s29 + $0xc8] sm:$0xff] }
  0x1b   : > { %v206_v14 = vld [vmem:[%s871_s29 + $0xe0] sm:$0xff]  ;;  %203 = vst [vmem:[%s162_s30 + $0x60] sm:$0xff] %v202_v12  ;;  %205 = vst [vmem:[%s162_s30 + $0x68] sm:$0xff] %v204_v13  ;;  %v208_v15 = vld [vmem:[%s871_s29 + $0xe8] sm:$0xff] }
  0x1c   : > { %207 = vst [vmem:[%s162_s30 + $0x70] sm:$0xff] %v206_v14  ;;  %v210_v16 = vld [vmem:[%s871_s29 + $0x100] sm:$0xff]  ;;  %v212_v17 = vld [vmem:[%s871_s29 + $0x108] sm:$0xff]  ;;  %209 = vst [vmem:[%s162_s30 + $0x78] sm:$0xff] %v208_v15 }
  0x1d   : > { %211 = vst [vmem:[%s162_s30 + $0x80] sm:$0xff] %v210_v16  ;;  %213 = vst [vmem:[%s162_s30 + $0x88] sm:$0xff] %v212_v17 }
  0x1e PF: > { %p686_p7 = scmp.ge.s32.totalorder %s802_s17, 1  ;;  %p218_p8 = scmp.lt.s32.totalorder %s802_s17, 3 }
  0x20   : > { %p219_p9 = pnand %p686_p7, %p218_p8 }
  0x21   : > { %s225_s5 = sand.u32 (!%p219_p9), 1, %s794_s15   ;;  %v804_v18 = vmov (!%p219_p9), 0   ;;  %v282_v19 = vld [vmem:[%s968_s2] sm:$0xff] (!%p219_p9)  ;;  %v283_v20 = vld [vmem:[%s968_s2 + $0x8] sm:$0xff] (!%p219_p9)  ;;  %vm393_vm0 = vcmask (!%p219_p9), 1043456   ;;  %vm389_vm1 = vcmask (!%p219_p9), 588800  }
  0x22   : > { %222 = sbr.rel (%p219_p9) target bundleno = 436 (0x1b4), region = 51  ;;  %438 = vmatprep.mubr.bf16.mxu0 (!%p219_p9), %v804_v18  ;;  %481 = vmatprep.mubr.bf16.mxu1 (!%p219_p9), %v804_v18  ;;  %v779_v45 = vld [vmem:[%s967_s1] sm:$0xff] (!%p219_p9)   ;;  %s687_s14 = sshll.u32 (!%p219_p9), %s225_s5, 6  ;;  %vm526_vm2 = vcmask (!%p219_p9), 7168   ;;  %vm547_vm3 = vcmask (!%p219_p9), 15368  }
  0x23   : > { %s724_s6 = smul.u32 (!%p219_p9), 144, %s225_s5  ;;  %750 = vset.pattern.permute.xlu0 (!%p219_p9), %v804_v18  ;;  %s927_s15 = scalar_lea.vmem (!%p219_p9), [#allocation3], %s687_s14 }
  0x24   : > { %286 = vperm.xlu0 (!%p219_p9), %750, %v282_v19   ;;  %p256_p10 = scmp.lt.s32.totalorder (!%p219_p9), %s846_s18, 1 }
  0x25   : > { %s902_s11 = scalar_lea.vmem (!%p219_p9), [#allocation2], %s724_s6 }
  0x26   : > { %v751_v21 = vld [vmem:[%s902_s11 + $0x4] ss:$16 sps:$4 sm:$0xff] (!%p219_p9)   ;;  %v753_v22 = vld [vmem:[%s902_s11 + $0xc] ss:$16 sps:$4 sm:$0xff] (!%p219_p9)   ;;  %v755_v23 = vld [vmem:[%s902_s11] ss:$16 sps:$4 sm:$0xff] (!%p219_p9)  }
  0x27   : > { %406 = vmatprep.subr.bf16.mxu0 (!%p219_p9), %v751_v21  ;;  %v756_v24 = vld [vmem:[%s902_s11 + $0x8] ss:$16 sps:$4 sm:$0xff] (!%p219_p9)   ;;  %449 = vmatprep.subr.bf16.mxu1 (!%p219_p9), %v753_v22  ;;  %v757_v25 = vld [vmem:[%s902_s11 + $0x24] ss:$16 sps:$4 sm:$0xff] (!%p219_p9)   ;;  %v759_v26 = vld [vmem:[%s902_s11 + $0x2c] ss:$16 sps:$4 sm:$0xff] (!%p219_p9)  }
  0x28   : > { %291 = vperm.xlu0 (!%p219_p9), %750, %v283_v20   ;;  %407 = vmatpush1.bf16.msra.mxu0 (!%p219_p9), %v755_v23  ;;  %v761_v27 = vld [vmem:[%s902_s11 + $0x20] ss:$16 sps:$4 sm:$0xff] (!%p219_p9)   ;;  %v762_v28 = vld [vmem:[%s902_s11 + $0x28] ss:$16 sps:$4 sm:$0xff] (!%p219_p9)   ;;  %v763_v29 = vld [vmem:[%s902_s11 + $0x44] ss:$16 sps:$4 sm:$0xff] (!%p219_p9)  }
  0x29   : > { %450 = vmatpush1.bf16.msra.mxu1 %v756_v24  ;;  %408 = vmatprep.subr.bf16.mxu0 %v757_v25  ;;  %v765_v30 = vld [vmem:[%s902_s11 + $0x4c] ss:$16 sps:$4 sm:$0xff]   ;;  %v767_v31 = vld [vmem:[%s902_s11 + $0x40] ss:$16 sps:$4 sm:$0xff]   ;;  %v768_v32 = vld [vmem:[%s902_s11 + $0x48] ss:$16 sps:$4 sm:$0xff]  }
  0x2a   : > { %451 = vmatprep.subr.bf16.mxu1 %v759_v26  ;;  %v769_v33 = vld [vmem:[%s902_s11 + $0x64] ss:$16 sps:$4 sm:$0xff]   ;;  %v771_v34 = vld [vmem:[%s902_s11 + $0x6c] ss:$16 sps:$4 sm:$0xff]   ;;  %v773_v37 = vld [vmem:[%s902_s11 + $0x60] ss:$16 sps:$4 sm:$0xff]  }
  0x2b   : > { %v280_v35 = vld [vmem:[%s902_s11 + $0x80] sm:$0xff]  ;;  %v281_v36 = vld [vmem:[%s902_s11 + $0x88] sm:$0xff]  ;;  %s257_s17 = scalar_select %p256_p10, %s846_s18, 1 }
  0x2c   : > { %409 = vmatpush1.bf16.msra.mxu0 %v761_v27  ;;  %v774_v38 = vld [vmem:[%s902_s11 + $0x68] ss:$16 sps:$4 sm:$0xff]   ;;  %v708_v39 = vcombine.high %v280_v35, %v280_v35  ;;  %v710_v40 = vcombine.high %v281_v36, %v281_v36  ;;  %v707_v41 = vcombine.low %v280_v35, %v280_v35  ;;  %v709_v42 = vcombine.low %v281_v36, %v281_v36  ;;  %s722_s26 = sshll.u32 (%p861_p5), %s846_s18, 5 }
  0x2d   : > { %452 = vmatpush1.bf16.msra.mxu1 %v762_v28  ;;  %410 = vmatprep.subr.bf16.mxu0 %v763_v29  ;;  %s721_s20 = sshll.u32 %s257_s17, 4  ;;  %s564_s29 = scalar_lea.vmem (%p861_p5), %s969_s3, %s722_s26 }
  0x2e   : > { %453 = vmatprep.subr.bf16.mxu1 %v765_v30  ;;  %v395_v43 = vsel %vm393_vm0, %v707_v41, 0  ;;  %v401_v44 = vsel %vm393_vm0, %v709_v42, 0  ;;  %s260_s25 = scalar_lea.vmem %s970_s4, %s721_s20 }
  0x30   : > { %411 = vmatpush1.bf16.msra.mxu0 %v767_v31 }
  0x31   : > { %454 = vmatpush1.bf16.msra.mxu1 %v768_v32  ;;  %412 = vmatprep.subr.bf16.mxu0 %v769_v33 }
  0x32   : > { %455 = vmatprep.subr.bf16.mxu1 %v771_v34 }
  0x34   : > { %413 = vmatpush1.bf16.msra.mxu0 %v773_v37 }
  0x35   : > { %456 = vmatpush1.bf16.msra.mxu1 %v774_v38  ;;  %711 = vmatprep.subr.msk.bf16.mxu0 %vm393_vm0, %v708_v39 }
  0x36   : > { %713 = vmatprep.subr.msk.bf16.mxu1 %vm393_vm0, %v710_v40 }
  0x38   : > { %415 = vmatpush1.bf16.msra.mxu0 %v395_v43 }
  0x39   : > { %458 = vmatpush1.bf16.msra.mxu1 %v401_v44 }
  0x3b   : > { %712 = vmatmul.mubr.msk.bf16.vlgmr.msra.gmra.mrb[0].mxu0 %vm389_vm1, %v779_v45 }
  0x3c   : > { %714 = vmatmul.mubr.msk.bf16.vlgmr.msra.gmra.mrb[0].mxu1 %vm389_vm1, %v779_v45 }
  0xa3   : > { %v287_v46 = vpop.permute.xlu0 %286 }
  0xa7   : > { %v292_v47 = vpop.permute.xlu0 %291 }
 0x10e   : > { %v440_v48 = vpop.f32.mrb[0].mxu0 }
 0x10f   : > { %v483_v49 = vpop.f32.mrb[0].mxu1  ;;  %v441_v50 = vadd.f32 %v440_v48, %v287_v46  ;;  %v442_v52 = vpop.f32.mrb[1].mxu0 }
 0x110   : > { %v484_v51 = vadd.f32 %v483_v49, %v287_v46  ;;  %v485_v53 = vpop.f32.mrb[1].mxu1  ;;  %v443_v54 = vadd.f32 %v442_v52, %v287_v46  ;;  %v444_v56 = vpop.f32.mrb[2].mxu0 }
 0x111   : > { %v486_v55 = vadd.f32 %v485_v53, %v287_v46  ;;  %v487_v57 = vpop.f32.mrb[2].mxu1  ;;  %v492_v58 = vmul.f32 0.2, %v441_v50  ;;  %v445_v60 = vadd.f32 %v444_v56, %v292_v47  ;;  %v446_v62 = vpop.f32.mrb[3].mxu0 }
 0x112   : > { %v494_v59 = vmul.f32 0.2, %v484_v51  ;;  %v488_v61 = vadd.f32 %v487_v57, %v292_v47  ;;  %v489_v63 = vpop.f32.mrb[3].mxu1  ;;  %v493_v0 = vmul.f32 0.2, %v443_v54  ;;  %v447_v2 = vadd.f32 %v446_v62, %v292_v47 }
 0x113   : > { %v495_v1 = vmul.f32 0.2, %v486_v55  ;;  %v490_v3 = vadd.f32 %v489_v63, %v292_v47  ;;  %v500_v4 = vmax.f32 %v441_v50, %v492_v58  ;;  %v496_v6 = vmul.f32 0.2, %v445_v60 }
 0x114   : > { %v502_v5 = vmax.f32 %v484_v51, %v494_v59  ;;  %v498_v7 = vmul.f32 0.2, %v488_v61  ;;  %v501_v8 = vmax.f32 %v443_v54, %v493_v0  ;;  %v497_v10 = vmul.f32 0.2, %v447_v2 }
 0x115   : > { %v503_v9 = vmax.f32 %v486_v55, %v495_v1  ;;  %v499_v11 = vmul.f32 0.2, %v490_v3  ;;  %508 = vst [vmem:[%s927_s15] sm:$0xff] %v500_v4  ;;  %v529_v12 = vmul.f32 %v500_v4, %v500_v4  ;;  %v504_v13 = vmax.f32 %v445_v60, %v496_v6 }
 0x116   : > { %510 = vst [vmem:[%s927_s15 + $0x10] sm:$0xff] %v502_v5  ;;  %v506_v14 = vmax.f32 %v488_v61, %v498_v7  ;;  %509 = vst [vmem:[%s927_s15 + $0x8] sm:$0xff] %v501_v8  ;;  %v530_v15 = vmul.f32 %v501_v8, %v501_v8  ;;  %v505_v16 = vmax.f32 %v447_v2, %v497_v10 }
 0x117   : > { %511 = vst [vmem:[%s927_s15 + $0x18] sm:$0xff] %v503_v9  ;;  %v507_v17 = vmax.f32 %v490_v3, %v499_v11  ;;  %v516_v18 = vadd.f32 %v501_v8, %v500_v4  ;;  %512 = vst [vmem:[%s927_s15 + $0x20] sm:$0xff] %v504_v13  ;;  %v533_v19 = vmul.f32 %v504_v13, %v504_v13 }
 0x118   : > { %514 = vst [vmem:[%s927_s15 + $0x30] sm:$0xff] %v506_v14  ;;  %v531_v20 = vmul.f32 %v502_v5, %v502_v5  ;;  %513 = vst [vmem:[%s927_s15 + $0x28] sm:$0xff] %v505_v16  ;;  %v534_v21 = vmul.f32 %v505_v16, %v505_v16  ;;  %v537_v23 = vadd.f32 %v530_v15, %v529_v12 }
 0x119   : > { %515 = vst [vmem:[%s927_s15 + $0x38] sm:$0xff] %v507_v17  ;;  %v517_v22 = vadd.f32 %v516_v18, %v502_v5  ;;  %v521_v24 = vadd.f32 %v505_v16, %v504_v13  ;;  %v532_v25 = vmul.f32 %v503_v9, %v503_v9  ;;  %v535_v26 = vmul.f32 %v506_v14, %v506_v14 }
 0x11a   : > { %v538_v28 = vadd.f32 %v537_v23, %v531_v20  ;;  %v542_v30 = vadd.f32 %v534_v21, %v533_v19  ;;  %v536_v33 = vmul.f32 %v507_v17, %v507_v17 }
 0x11b   : > { %v518_v27 = vadd.f32 %v517_v22, %v503_v9  ;;  %v522_v29 = vadd.f32 %v521_v24, %v506_v14 }
 0x11c   : > { %v539_v31 = vadd.f32 %v538_v28, %v532_v25  ;;  %v543_v34 = vadd.f32 %v542_v30, %v535_v26  ;;  %v577_v40 = vld [vmem:[%s927_s15] sm:$0xff] (%p861_p5) }
 0x11d   : > { %519 = vadd.xlane.f32.xlu1 %v518_v27  ;;  %v523_v32 = vadd.f32 %v522_v29, %v507_v17  ;;  %v579_v41 = vld [vmem:[%s927_s15 + $0x8] sm:$0xff] (%p861_p5)  ;;  %v581_v42 = vld [vmem:[%s927_s15 + $0x10] sm:$0xff] (%p861_p5)  ;;  %578 = vst [vmem:[%s564_s29] sm:$0xff] (%p861_p5), %v577_v40 }
 0x11e   : > { %540 = vadd.xlane.f32.xlu0 %v539_v31  ;;  %v544_v35 = vadd.f32 %v543_v34, %v536_v33  ;;  %v583_v43 = vld [vmem:[%s927_s15 + $0x18] sm:$0xff] (%p861_p5)  ;;  %v585_v44 = vld [vmem:[%s927_s15 + $0x20] sm:$0xff] (%p861_p5)  ;;  %580 = vst [vmem:[%s564_s29 + $0x8] sm:$0xff] (%p861_p5), %v579_v41  ;;  %582 = vst [vmem:[%s564_s29 + $0x10] sm:$0xff] (%p861_p5), %v581_v42 }
 0x11f   : > { %v587_v45 = vld [vmem:[%s927_s15 + $0x28] sm:$0xff] (%p861_p5)  ;;  %584 = vst [vmem:[%s564_s29 + $0x18] sm:$0xff] (%p861_p5), %v583_v43  ;;  %586 = vst [vmem:[%s564_s29 + $0x40] sm:$0xff] (%p861_p5), %v585_v44  ;;  %v589_v46 = vld [vmem:[%s927_s15 + $0x30] sm:$0xff] (%p861_p5) }
 0x120   : > { %588 = vst [vmem:[%s564_s29 + $0x48] sm:$0xff] (%p861_p5), %v587_v45  ;;  %v591_v47 = vld [vmem:[%s927_s15 + $0x38] sm:$0xff] (%p861_p5)  ;;  %590 = vst [vmem:[%s564_s29 + $0x50] sm:$0xff] (%p861_p5), %v589_v46 }
 0x121   : > { %524 = vadd.xlane.f32.xlu1 %v523_v32  ;;  %592 = vst [vmem:[%s564_s29 + $0x58] sm:$0xff] (%p861_p5), %v591_v47 }
 0x125   : > { %545 = vadd.xlane.f32.xlu1 %v544_v35 }
 0x1aa   : > { %v520_v36 = vpop.xlane.xlu1 %519 }
 0x1ab   : > { %527 = vst.msk [vmem:[%s260_s25] sm:$0xff] %vm526_vm2, %v520_v36  ;;  %v541_v37 = vpop.xlane.xlu0 %540 }
 0x1ac   : > { %548 = vst.msk [vmem:[%s260_s25] sm:$0xff] %vm547_vm3, %v541_v37 }
 0x1ad   : > { %561 = sbr.rel (!%p861_p5) target bundleno = 436 (0x1b4), region = 59 }
 0x1ae   : > { %v525_v38 = vpop.xlane.xlu1 %524 }
 0x1af   : > { %528 = vst.msk [vmem:[%s260_s25 + $0x8] sm:$0xff] %vm526_vm2, %v525_v38 }
 0x1b2   : > { %v546_v39 = vpop.xlane.xlu1 %545 }
 0x1b3   : > { %549 = vst.msk [vmem:[%s260_s25 + $0x8] sm:$0xff] %vm547_vm3, %v546_v39 }
 0x1b4 PF: > { %p12_p11 = scmp.ge.s32.totalorder %s849_s19, 4   ;;  %s972_s15 = smov %s798_s16 }
 0x1b5   : > { %s973_s16 = smov %s859_s22  ;;  %s974_s17 = smov %s849_s19 }
 0x1b6   :  { %14 = sbr.rel (!%p12_p11) target bundleno = 2 (0x2), region = 125 }

// kernel: vae_forward.17
= control target key start
LH: loop header
LB: loop body
LE: loop exit
PB: predicated region body
PF: predicated region fallthrough
CT: control target
= control target key end

     0   :  { %s498_s9 = smov 0   ;;  %s500_s10 = smov 0   ;;  %s586_s0 = inlined_call_operand.vmem [shape: f32[16,1024], index: 0, kind: input, shape index: {}]   ;;  %s587_s1 = inlined_call_operand.vmem [shape: f32[16,2], index: 1, kind: input, shape index: {}]   ;;  %s588_s2 = inlined_call_operand.vmem [shape: f32[16,1024], index: 2, kind: output, shape index: {}]  }
   0x1   :  { %s502_s11 = smov 0  }
   0x2 LB: > { %s371_s12 = sadd.s32 4294967295, %s479_s11   ;;  %s515_s13 = sadd.s32 1, %s479_s11   ;;  %s479_s11 = sphi %s502_s11, %s592_s11   ;;  %s475_s10 = sphi %s500_s10, %s591_s10   ;;  %s471_s9 = sphi %s498_s9, %s590_s9  }
   0x3   : > { %s16_s14 = ssub.s32 %s479_s11, %s515_s13  ;;  %s19_s15 = sadd.s32 1, %s475_s10 }
   0x4   : > { %p17_p0 = scmp.eq.s32.totalorder %s16_s14, 0  ;;  %p26_p1 = scmp.ne.s32.totalorder %s475_s10, %s471_s9 }
   0x5   : > { %p27_p2 = scmp.eq.s32.totalorder %s479_s11, 0  ;;  %p77_p3 = scmp.eq.s32.totalorder %s371_s12, 1 }
   0x6   : > { %s526_s16 = scalar_select %p17_p0, %s475_s10, %s19_s15  }
   0x7   : > { %p28_p4 = por %p27_p2, %p26_p1  ;;  %p528_p5 = por %p77_p3, %p26_p1 }
   0x8   : > { %p374_p6 = scmp.ge.s32.totalorder %s479_s11, 2 }
   0xa   : > { %102 = sbr.rel (%p374_p6) target bundleno = 25 (0x19), region = 20 }
  0x11   : > { %105 = sbr.rel (!%p28_p4) target bundleno = 25 (0x19), region = 24  ;;  %s107_s18 = sand.u32 (%p28_p4), 1, %s475_s10  }
  0x12   : > { %s394_s19 = sshll.u32 (%p28_p4), %s479_s11, 5  ;;  %s375_s20 = sshll.u32 (%p28_p4), %s107_s18, 6 }
  0x13   : > { %s112_s23 = scalar_lea.vmem (%p28_p4), %s586_s0, %s394_s19  ;;  %s109_s24 = scalar_lea.vmem (%p28_p4), [#allocation2], %s375_s20 }
  0x14   : > { %v125_v0 = vld [vmem:[%s112_s23] sm:$0xff] (%p28_p4)  ;;  %v127_v1 = vld [vmem:[%s112_s23 + $0x8] sm:$0xff] (%p28_p4)  ;;  %v129_v2 = vld [vmem:[%s112_s23 + $0x10] sm:$0xff] (%p28_p4) }
  0x15   : > { %126 = vst [vmem:[%s109_s24] sm:$0xff] (%p28_p4), %v125_v0  ;;  %128 = vst [vmem:[%s109_s24 + $0x8] sm:$0xff] (%p28_p4), %v127_v1  ;;  %v131_v3 = vld [vmem:[%s112_s23 + $0x18] sm:$0xff] (%p28_p4)  ;;  %v133_v4 = vld [vmem:[%s112_s23 + $0x40] sm:$0xff] (%p28_p4) }
  0x16   : > { %130 = vst [vmem:[%s109_s24 + $0x10] sm:$0xff] (%p28_p4), %v129_v2  ;;  %v135_v5 = vld [vmem:[%s112_s23 + $0x48] sm:$0xff] (%p28_p4)  ;;  %132 = vst [vmem:[%s109_s24 + $0x18] sm:$0xff] (%p28_p4), %v131_v3  ;;  %v137_v6 = vld [vmem:[%s112_s23 + $0x50] sm:$0xff] (%p28_p4) }
  0x17   : > { %134 = vst [vmem:[%s109_s24 + $0x20] sm:$0xff] (%p28_p4), %v133_v4  ;;  %136 = vst [vmem:[%s109_s24 + $0x28] sm:$0xff] (%p28_p4), %v135_v5  ;;  %v139_v7 = vld [vmem:[%s112_s23 + $0x58] sm:$0xff] (%p28_p4) }
  0x18   : > { %138 = vst [vmem:[%s109_s24 + $0x30] sm:$0xff] %v137_v6  ;;  %140 = vst [vmem:[%s109_s24 + $0x38] sm:$0xff] %v139_v7 }
  0x19 PF: > { %p378_p7 = scmp.ge.s32.totalorder %s479_s11, 1  ;;  %p145_p8 = scmp.lt.s32.totalorder %s479_s11, 3 }
  0x1b   : > { %p146_p9 = pnand %p378_p7, %p145_p8 }
  0x1c   : > { %v182_v8 = vld [vmem:[%s587_s1] sm:$0xff] (!%p146_p9)  ;;  %v481_v9 = vmov (!%p146_p9), 1   ;;  %v482_v10 = vmov (!%p146_p9), 0   ;;  %v183_v11 = vld [vmem:[%s587_s1 + $0x8] sm:$0xff] (!%p146_p9)  ;;  %s152_s29 = sand.u32 (!%p146_p9), 1, %s471_s9  }
  0x1d   : > { %149 = sbr.rel (%p146_p9) target bundleno = 204 (0xcc), region = 47  ;;  %423 = vset.pattern.permute.xlu1 (!%p146_p9), %v481_v9  ;;  %422 = vset.pattern.permute.xlu0 (!%p146_p9), %v482_v10  ;;  %s547_s30 = sshll.u32 (!%p146_p9), %s152_s29, 6 }
  0x1e   : > { %203 = vperm.xlu1 (!%p146_p9), %423, %v182_v8   ;;  %186 = vperm.xlu0 (!%p146_p9), %422, %v182_v8   ;;  %s154_s3 = scalar_lea.vmem (!%p146_p9), [#allocation2], %s547_s30  ;;  %s551_s4 = scalar_lea.vmem (!%p146_p9), [#allocation3], %s547_s30 }
  0x1f   : > { %v174_v12 = vld [vmem:[%s154_s3] sm:$0xff] (!%p146_p9)  ;;  %v175_v13 = vld [vmem:[%s154_s3 + $0x8] sm:$0xff] (!%p146_p9)  ;;  %v176_v14 = vld [vmem:[%s154_s3 + $0x10] sm:$0xff] (!%p146_p9) }
  0x20   : > { %v177_v15 = vld [vmem:[%s154_s3 + $0x18] sm:$0xff] (!%p146_p9)  ;;  %v178_v22 = vld [vmem:[%s154_s3 + $0x20] sm:$0xff] (!%p146_p9)  ;;  %v179_v27 = vld [vmem:[%s154_s3 + $0x28] sm:$0xff] (!%p146_p9) }
  0x21   : > { %v180_v28 = vld [vmem:[%s154_s3 + $0x30] sm:$0xff] (!%p146_p9)  ;;  %v181_v29 = vld [vmem:[%s154_s3 + $0x38] sm:$0xff] (!%p146_p9) }
  0x22   : > { %207 = vperm.xlu1 (!%p146_p9), %423, %v183_v11   ;;  %191 = vperm.xlu0 (!%p146_p9), %422, %v183_v11  }
  0x24   : > { %s395_s5 = sshll.u32 (%p528_p5), %s371_s12, 5 }
  0x25   : > { %s283_s8 = scalar_lea.vmem (%p528_p5), %s588_s2, %s395_s5 }
  0x26   : > { %424 = vset.pattern.permute.xlu0 %v481_v9 }
  0x9d   : > { %v204_v16 = vpop.permute.xlu1 %203  ;;  %v187_v17 = vpop.permute.xlu0 %186 }
  0x9e   : > { %v194_v18 = vsub.f32 %v174_v12, %v187_v17  ;;  %v195_v19 = vsub.f32 %v175_v13, %v187_v17  ;;  %v196_v20 = vsub.f32 %v176_v14, %v187_v17  ;;  %v197_v21 = vsub.f32 %v177_v15, %v187_v17 }
  0xa0   : > { %v210_v23 = vmul.f32 %v204_v16, %v194_v18  ;;  %v211_v24 = vmul.f32 %v204_v16, %v195_v19  ;;  %v212_v25 = vmul.f32 %v204_v16, %v196_v20  ;;  %v213_v26 = vmul.f32 %v204_v16, %v197_v21 }
  0xa1   : > { %v192_v30 = vpop.permute.xlu0 %191  ;;  %v208_v36 = vpop.permute.xlu1 %207 }
  0xa2   : > { %v381_v31 = vmul.f32 -1.442695, %v210_v23  ;;  %v382_v32 = vmul.f32 -1.442695, %v211_v24  ;;  %v383_v33 = vmul.f32 -1.442695, %v212_v25  ;;  %v198_v34 = vsub.f32 %v178_v22, %v192_v30 }
  0xa3   : > { %v384_v35 = vmul.f32 -1.442695, %v213_v26  ;;  %v199_v37 = vsub.f32 %v179_v27, %v192_v30  ;;  %v200_v38 = vsub.f32 %v180_v28, %v192_v30  ;;  %v201_v39 = vsub.f32 %v181_v29, %v192_v30 }
  0xa4   : > { %425 = vpow2.f32 %v381_v31  ;;  %v214_v40 = vmul.f32 %v208_v36, %v198_v34 }
  0xa5   : > { %427 = vpow2.f32 %v382_v32  ;;  %v215_v41 = vmul.f32 %v208_v36, %v199_v37  ;;  %v216_v42 = vmul.f32 %v208_v36, %v200_v38  ;;  %v217_v43 = vmul.f32 %v208_v36, %v201_v39 }
  0xa6   : > { %429 = vpow2.f32 %v383_v33  ;;  %v385_v44 = vmul.f32 -1.442695, %v214_v40 }
  0xa7   : > { %431 = vpow2.f32 %v384_v35  ;;  %v386_v45 = vmul.f32 -1.442695, %v215_v41  ;;  %v387_v46 = vmul.f32 -1.442695, %v216_v42  ;;  %v388_v47 = vmul.f32 -1.442695, %v217_v43 }
  0xa8   : > { %433 = vpow2.f32 %v385_v44 }
  0xa9   : > { %435 = vpow2.f32 %v386_v45 }
  0xaa   : > { %437 = vpow2.f32 %v387_v46 }
  0xab   : > { %439 = vpow2.f32 %v388_v47 }
  0xae   : > { %v426_v48 = vpop.eup %425 }
  0xaf   : > { %v428_v49 = vpop.eup %427  ;;  %v242_v50 = vadd.f32 1.0, %v426_v48 }
  0xb0   : > { %v430_v51 = vpop.eup %429  ;;  %v243_v52 = vadd.f32 1.0, %v428_v49 }
  0xb1   : > { %v432_v53 = vpop.eup %431  ;;  %v244_v54 = vadd.f32 1.0, %v430_v51  ;;  %441 = vrcp.f32 %v242_v50 }
  0xb2   : > { %v434_v55 = vpop.eup %433  ;;  %v245_v56 = vadd.f32 1.0, %v432_v53  ;;  %443 = vrcp.f32 %v243_v52 }
  0xb3   : > { %v436_v57 = vpop.eup %435  ;;  %445 = vrcp.f32 %v244_v54  ;;  %v246_v58 = vadd.f32 1.0, %v434_v55 }
  0xb4   : > { %v438_v59 = vpop.eup %437  ;;  %447 = vrcp.f32 %v245_v56  ;;  %v247_v60 = vadd.f32 1.0, %v436_v57 }
  0xb5   : > { %v440_v61 = vpop.eup %439  ;;  %v248_v62 = vadd.f32 1.0, %v438_v59  ;;  %449 = vrcp.f32 %v246_v58 }
  0xb6   : > { %v249_v63 = vadd.f32 1.0, %v440_v61  ;;  %451 = vrcp.f32 %v247_v60 }
  0xb7   : > { %453 = vrcp.f32 %v248_v62 }
  0xb8   : > { %455 = vrcp.f32 %v249_v63 }
  0xbb   : > { %v442_v0 = vpop.eup %441 }
  0xbc   : > { %v444_v1 = vpop.eup %443  ;;  %266 = vst [vmem:[%s551_s4] sm:$0xff] %v442_v0 }
  0xbd   : > { %v446_v2 = vpop.eup %445  ;;  %267 = vst [vmem:[%s551_s4 + $0x8] sm:$0xff] %v444_v1  ;;  %280 = sbr.rel (!%p528_p5) target bundleno = 204 (0xcc), region = 55 }
  0xbe   : > { %v448_v3 = vpop.eup %447  ;;  %268 = vst [vmem:[%s551_s4 + $0x10] sm:$0xff] %v446_v2 }
  0xbf   : > { %v450_v4 = vpop.eup %449  ;;  %269 = vst [vmem:[%s551_s4 + $0x18] sm:$0xff] %v448_v3 }
  0xc0   : > { %v452_v5 = vpop.eup %451  ;;  %270 = vst [vmem:[%s551_s4 + $0x20] sm:$0xff] %v450_v4 }
  0xc1   : > { %v454_v6 = vpop.eup %453  ;;  %271 = vst [vmem:[%s551_s4 + $0x28] sm:$0xff] %v452_v5 }
  0xc2   : > { %v456_v7 = vpop.eup %455  ;;  %272 = vst [vmem:[%s551_s4 + $0x30] sm:$0xff] %v454_v6 }
  0xc3   : > { %273 = vst [vmem:[%s551_s4 + $0x38] sm:$0xff] %v456_v7  ;;  %v296_v8 = vld [vmem:[%s551_s4] sm:$0xff] (%p528_p5) }
  0xc4   : > { %v298_v9 = vld [vmem:[%s551_s4 + $0x8] sm:$0xff]  ;;  %297 = vst [vmem:[%s283_s8] sm:$0xff] %v296_v8 }
  0xc5   : > { %v300_v10 = vld [vmem:[%s551_s4 + $0x10] sm:$0xff]  ;;  %299 = vst [vmem:[%s283_s8 + $0x8] sm:$0xff] %v298_v9 }
  0xc6   : > { %v302_v11 = vld [vmem:[%s551_s4 + $0x18] sm:$0xff]  ;;  %301 = vst [vmem:[%s283_s8 + $0x10] sm:$0xff] %v300_v10 }
  0xc7   : > { %v304_v12 = vld [vmem:[%s551_s4 + $0x20] sm:$0xff]  ;;  %303 = vst [vmem:[%s283_s8 + $0x18] sm:$0xff] %v302_v11 }
  0xc8   : > { %v306_v13 = vld [vmem:[%s551_s4 + $0x28] sm:$0xff]  ;;  %305 = vst [vmem:[%s283_s8 + $0x40] sm:$0xff] %v304_v12 }
  0xc9   : > { %307 = vst [vmem:[%s283_s8 + $0x48] sm:$0xff] %v306_v13  ;;  %v308_v14 = vld [vmem:[%s551_s4 + $0x30] sm:$0xff] }
  0xca   : > { %v310_v15 = vld [vmem:[%s551_s4 + $0x38] sm:$0xff]  ;;  %309 = vst [vmem:[%s283_s8 + $0x50] sm:$0xff] %v308_v14 }
  0xcb   : > { %311 = vst [vmem:[%s283_s8 + $0x58] sm:$0xff] %v310_v15 }
  0xcc PF: > { %p9_p10 = scmp.ge.s32.totalorder %s515_s13, 4   ;;  %s590_s9 = smov %s475_s10 }
  0xcd   : > { %s591_s10 = smov %s526_s16  ;;  %s592_s11 = smov %s515_s13 }
  0xce   :  { %11 = sbr.rel (!%p9_p10) target bundleno = 2 (0x2), region = 109 }

</bundles_post_ra>
